<compile_context>
chip_gen: v7x
topology: tpu7x:2x2x1
jax: 0.10.0
libtpu: 0.0.40
codegen_flags: <defaults>
</compile_context>

<pallas_src>
import functools

import numpy as np
import jax
import jax.numpy as jnp
from jax import lax
from jax.experimental import pallas as pl
from jax.experimental.pallas import tpu as pltpu


# ---------------------------------------------------------------------------
# Static (numpy) selector tensors used to fold conv structure into banded weights.
# ---------------------------------------------------------------------------
def _build_selectors():
    # SEL1[qh, p, q, v, a, b, j, kh, kw] == 1 iff input-parity slab (p, q), column v and
    # row-shift qh supply tap (kh, kw) of the conv1 output at pooled position (a, b, j).
    s, p, q, v, a, b, j, kh, kw = np.ogrid[0:2, 0:2, 0:2, 0:14, 0:2, 0:2, 0:13, 0:3, 0:3]
    sel1 = (((a + kh) // 2 == s) & ((a + kh) % 2 == p) &
            ((b + kw) % 2 == q) & (j + (b + kw) // 2 == v)).astype(np.float32)
    # SEL2[j, ow, kw] == 1 iff pooled width column j feeds conv2 tap kw of output column ow.
    j2, w2, k2 = np.ogrid[0:13, 0:9, 0:5]
    sel2 = (j2 - w2 == k2).astype(np.float32)
    return sel1, sel2


_SEL1, _SEL2 = _build_selectors()


def _pick_tile(n, max_tb=8):
    tb = min(n, max_tb)
    while n % tb:
        tb -= 1
    return tb


# ---------------------------------------------------------------------------
# Fused kernel: conv1+pool -> conv2 -> GroupNorm -> fc1 -> fc2 -> log_softmax(dim=0)
# ---------------------------------------------------------------------------
def _fused_kernel(x0_ref, band1_ref, b1v_ref, band2_ref, b2v_ref,
                  gamma_ref, beta_ref, wf1_ref, bf1_ref, wf2_ref, bf2_ref,
                  out_ref, acc_ref, *, tb):
    i = pl.program_id(0)

    # Small per-channel row vectors: loaded once, hoisted out of the sample loop.
    b1v = b1v_ref[...]          # (1, 65)   f32  b1[o] repeated over 13 width lanes
    b2v = b2v_ref[...]          # (1, 108)  f32
    gv = gamma_ref[...]         # (1, 108)  f32
    bv = beta_ref[...]          # (1, 108)  f32
    bf1 = bf1_ref[...]          # (1, 100)  f32
    bf2 = bf2_ref[...]          # (1, 10)   f32

    rows = []
    for t in range(tb):
        # x0: rows = pooled height (14), lanes = (row_parity, col_parity, width) = 56.
        x0 = x0_ref[t]                                           # (14, 56) bf16

        # ---- conv1 (3x3, 1->5) fused with the 2x2/2 max-pool: 2 banded GEMMs. ----
        # y1 lanes = (pool_phase_a, pool_phase_b, out_ch, width) = 4*5*13 = 260.
        y1 = (jnp.dot(x0[0:13, :], band1_ref[0], preferred_element_type=jnp.float32) +
              jnp.dot(x0[1:14, :], band1_ref[1], preferred_element_type=jnp.float32))
        ph = jnp.maximum(jnp.maximum(y1[:, 0:65], y1[:, 65:130]),
                         jnp.maximum(y1[:, 130:195], y1[:, 195:260]))
        # relu(maxpool(conv + b)) == relu(max over phases) since relu is monotone.
        pooled = jnp.maximum(ph + b1v, 0.0)                      # (13, 65) f32, lanes=(ch, width)
        pooled_b = pooled.astype(jnp.bfloat16)

        # ---- conv2 (5x5, 5->12): 5 row-shifted banded GEMMs; lanes = (out_ch, width) = 108. ----
        y2 = jnp.dot(pooled_b[0:9, :], band2_ref[0], preferred_element_type=jnp.float32)
        for kh in range(1, 5):
            y2 = y2 + jnp.dot(pooled_b[kh:kh + 9, :], band2_ref[kh],
                              preferred_element_type=jnp.float32)
        y2 = jnp.maximum(y2 + b2v, 0.0)                          # (9, 108) f32

        # ---- GroupNorm(3, 12): per-sample, two-pass stats; each group = 36 contiguous lanes. ----
        parts = []
        for g in range(3):
            xg = y2[:, 36 * g:36 * g + 36]                       # (9, 36): 4 channels x 9 width
            s = jnp.sum(jnp.sum(xg, axis=1, keepdims=True), axis=0, keepdims=True)
            mu = s * (1.0 / 324.0)
            d = xg - mu
            s2 = jnp.sum(jnp.sum(d * d, axis=1, keepdims=True), axis=0, keepdims=True)
            inv = lax.rsqrt(s2 * (1.0 / 324.0) + 1e-5)
            parts.append(d * inv)
        z2 = jnp.concatenate(parts, axis=-1) * gv + bv           # (9, 108) f32

        # ---- torch.flatten(x, 1): the NCHW permutation is folded into wf1's rows, so the
        #      flatten is just a lane-concat of the 9 output rows (no transpose). ----
        feat = jnp.concatenate([z2[oh:oh + 1, :] for oh in range(9)], axis=-1)   # (1, 972)

        h = jnp.maximum(jnp.dot(feat.astype(jnp.bfloat16), wf1_ref[...],
                                preferred_element_type=jnp.float32) + bf1, 0.0)  # (1, 100)
        zt = jnp.dot(h.astype(jnp.bfloat16), wf2_ref[...],
                     preferred_element_type=jnp.float32) + bf2                   # (1, 10)
        rows.append(zt)

    acc_ref[pl.ds(i * tb, tb), :] = jnp.concatenate(rows, axis=0)

    # LogSoftmax over dim=0 (the batch) couples all samples -> applied once on the
    # VMEM-resident logits at the final grid step (grid runs sequentially: "arbitrary").
    @pl.when(i == pl.num_programs(0) - 1)
    def _():
        z = acc_ref[...]                                         # (N, 10) f32
        m = jnp.max(z, axis=0, keepdims=True)
        lse = jnp.log(jnp.sum(jnp.exp(z - m), axis=0, keepdims=True)) + m
        out_ref[...] = z - lse


# ---------------------------------------------------------------------------
# Forward pass (eval path).
# TODO(synk): training-mode branch (CrossEntropyLoss on labels) not implemented.
# ---------------------------------------------------------------------------
@jax.jit
def classification_forward(x, params):
    N = x.shape[0]
    assert x.shape[1:] == (1, 28, 28)
    tb = _pick_tile(N)

    # --- data-side glue: 2x2 parity decomposition of the input (same bytes as x). ---
    x2d = x[:, 0]                                                # (N, 28, 28)
    x0 = jnp.concatenate([x2d[:, p::2, q::2] for p in (0, 1) for q in (0, 1)],
                         axis=-1).astype(jnp.bfloat16)           # (N, 14, 56)

    # --- weight-only glue: fold conv/pool structure into banded (block-Toeplitz) matrices. ---
    w1 = params["w1"][:, 0]                                      # (5, 3, 3)
    band1 = jnp.einsum('spqvabjkl,okl->spqvaboj', _SEL1, w1)
    band1 = band1.reshape(2, 56, 260).astype(jnp.bfloat16)       # (qh, (p,q,v), (a,b,o,j))
    band2 = jnp.einsum('jwk,dchk->hcjdw', _SEL2, params["w2"])
    band2 = band2.reshape(5, 65, 108).astype(jnp.bfloat16)       # (kh, (c,j), (d,ow))

    b1v = jnp.repeat(params["b1"], 13).reshape(1, 65).astype(jnp.float32)
    b2v = jnp.repeat(params["b2"], 9).reshape(1, 108).astype(jnp.float32)
    gv = jnp.repeat(params["gamma"], 9).reshape(1, 108).astype(jnp.float32)
    bv = jnp.repeat(params["beta"], 9).reshape(1, 108).astype(jnp.float32)

    # fc1 weight with the NCHW-flatten permutation folded in: rows ordered (out_h, ch, out_w)
    # to match the kernel's lane-concat feature layout.
    wf1p = params["wf1"].reshape(100, 12, 9, 9).transpose(2, 1, 3, 0).reshape(972, 100)
    wf1p = wf1p.astype(jnp.bfloat16)
    bf1 = params["bf1"].reshape(1, 100).astype(jnp.float32)
    wf2t = params["wf2"].T.astype(jnp.bfloat16)                  # (100, 10)
    bf2 = params["bf2"].reshape(1, 10).astype(jnp.float32)

    kernel = functools.partial(_fused_kernel, tb=tb)
    return pl.pallas_call(
        kernel,
        out_shape=jax.ShapeDtypeStruct((N, 10), jnp.float32),
        grid_spec=pltpu.PrefetchScalarGridSpec(
            num_scalar_prefetch=0,
            grid=(N // tb,),
            in_specs=[
                pl.BlockSpec((tb, 14, 56), lambda i: (i, 0, 0)),     # batch-tiled input phases
                pl.BlockSpec((2, 56, 260), lambda i: (0, 0, 0)),     # conv1 band (fetched once)
                pl.BlockSpec((1, 65), lambda i: (0, 0)),
                pl.BlockSpec((5, 65, 108), lambda i: (0, 0, 0)),     # conv2 band
                pl.BlockSpec((1, 108), lambda i: (0, 0)),
                pl.BlockSpec((1, 108), lambda i: (0, 0)),
                pl.BlockSpec((1, 108), lambda i: (0, 0)),
                pl.BlockSpec((972, 100), lambda i: (0, 0)),          # fc1 (flatten-permuted)
                pl.BlockSpec((1, 100), lambda i: (0, 0)),
                pl.BlockSpec((100, 10), lambda i: (0, 0)),
                pl.BlockSpec((1, 10), lambda i: (0, 0)),
            ],
            out_specs=pl.BlockSpec((N, 10), lambda i: (0, 0)),       # VMEM-resident logits
            scratch_shapes=[pltpu.VMEM((N, 10), jnp.float32)],
        ),
        compiler_params=pltpu.CompilerParams(
            # log_softmax(dim=0) couples the whole batch -> the batch grid must be sequential.
            dimension_semantics=("arbitrary",),
        ),
    )(x0, band1, b1v, band2, b2v, gv, bv, wf1p, bf1, wf2t, bf2)


# ---------------------------------------------------------------------------
# Pure-JAX reference (sanity check only).
# ---------------------------------------------------------------------------
def reference_forward(x, p):
    dn = ("NCHW", "OIHW", "NCHW")
    y = lax.conv_general_dilated(x, p["w1"], (1, 1), "VALID", dimension_numbers=dn)
    y = jnp.maximum(y + p["b1"][None, :, None, None], 0.0)
    y = lax.reduce_window(y, -jnp.inf, lax.max, (1, 1, 2, 2), (1, 1, 2, 2), "VALID")
    y = lax.conv_general_dilated(y, p["w2"], (1, 1), "VALID", dimension_numbers=dn)
    y = jnp.maximum(y + p["b2"][None, :, None, None], 0.0)
    N = y.shape[0]
    yg = y.reshape(N, 3, 4 * 9 * 9)
    mu = yg.mean(-1, keepdims=True)
    var = yg.var(-1, keepdims=True)
    yg = (yg - mu) / jnp.sqrt(var + 1e-5)
    y = yg.reshape(N, 12, 9, 9) * p["gamma"][None, :, None, None] + p["beta"][None, :, None, None]
    f = y.reshape(N, 972)
    h = jnp.maximum(f @ p["wf1"].T + p["bf1"], 0.0)
    z = h @ p["wf2"].T + p["bf2"]
    return jax.nn.log_softmax(z, axis=0)


# ---------------------------------------------------------------------------
if __name__ == "__main__":
    key = jax.random.PRNGKey(0)
    ks = jax.random.split(key, 9)

    def uinit(k, shape, fan_in):
        bound = 1.0 / np.sqrt(fan_in)
        return jax.random.uniform(k, shape, jnp.float32, -bound, bound)

    params = {
        "w1": uinit(ks[0], (5, 1, 3, 3), 1 * 3 * 3),
        "b1": uinit(ks[1], (5,), 1 * 3 * 3),
        "w2": uinit(ks[2], (12, 5, 5, 5), 5 * 5 * 5),
        "b2": uinit(ks[3], (12,), 5 * 5 * 5),
        "gamma": jnp.ones((12,), jnp.float32),
        "beta": jnp.zeros((12,), jnp.float32),
        "wf1": uinit(ks[4], (100, 972), 972),
        "bf1": uinit(ks[5], (100,), 972),
        "wf2": uinit(ks[6], (10, 100), 100),
        "bf2": uinit(ks[7], (10,), 100),
    }

    # 28x28 input is required by fc1 (12*9*9 = 972); batch kept small.
    x = jax.random.normal(ks[8], (2, 1, 28, 28), jnp.float32)

    out = jax.block_until_ready(classification_forward(x, params))
    ref = jax.block_until_ready(reference_forward(x, params))

    assert out.shape == (2, 10) and out.dtype == jnp.float32
    assert bool(jnp.all(jnp.isfinite(out)))
    err = float(jnp.max(jnp.abs(out - ref)))
    assert np.allclose(np.asarray(out), np.asarray(ref), atol=5e-2, rtol=5e-2), (
        f"mismatch: max abs err {err}")

    print("KERNEL_OK")
</pallas_src>

<mosaic_0001>
module attributes {stable_mosaic.version = 11 : i64} {
  func.func @_fused_kernel(%arg0: i32, %arg1: memref<2x14x56xbf16, #tpu.memory_space<vmem>>, %arg2: memref<2x56x260xbf16, #tpu.memory_space<vmem>>, %arg3: memref<1x65xf32, #tpu.memory_space<vmem>>, %arg4: memref<5x65x108xbf16, #tpu.memory_space<vmem>>, %arg5: memref<1x108xf32, #tpu.memory_space<vmem>>, %arg6: memref<1x108xf32, #tpu.memory_space<vmem>>, %arg7: memref<1x108xf32, #tpu.memory_space<vmem>>, %arg8: memref<972x100xbf16, #tpu.memory_space<vmem>>, %arg9: memref<1x100xf32, #tpu.memory_space<vmem>>, %arg10: memref<100x10xbf16, #tpu.memory_space<vmem>>, %arg11: memref<1x10xf32, #tpu.memory_space<vmem>>, %arg12: memref<2x10xf32, #tpu.memory_space<vmem>>, %arg13: memref<2x10xf32, #tpu.memory_space<vmem>>) attributes {dimension_semantics = [#tpu.dimension_semantics<arbitrary>], iteration_bounds = array<i64: 1>, scalar_prefetch = 0 : i64, scratch_operands = 1 : i64, tpu.core_type = #tpu.core_type<tc>, window_params = [{transform_indices = @transform_0, window_bounds = array<i64: 2, 14, 56>}, {pipeline_mode = #tpu.pipeline_mode<synchronous>, transform_indices = @transform_1, window_bounds = array<i64: 2, 56, 260>}, {pipeline_mode = #tpu.pipeline_mode<synchronous>, transform_indices = @transform_2, window_bounds = array<i64: 1, 65>}, {pipeline_mode = #tpu.pipeline_mode<synchronous>, transform_indices = @transform_3, window_bounds = array<i64: 5, 65, 108>}, {pipeline_mode = #tpu.pipeline_mode<synchronous>, transform_indices = @transform_4, window_bounds = array<i64: 1, 108>}, {pipeline_mode = #tpu.pipeline_mode<synchronous>, transform_indices = @transform_5, window_bounds = array<i64: 1, 108>}, {pipeline_mode = #tpu.pipeline_mode<synchronous>, transform_indices = @transform_6, window_bounds = array<i64: 1, 108>}, {pipeline_mode = #tpu.pipeline_mode<synchronous>, transform_indices = @transform_7, window_bounds = array<i64: 972, 100>}, {pipeline_mode = #tpu.pipeline_mode<synchronous>, transform_indices = @transform_8, window_bounds = array<i64: 1, 100>}, {pipeline_mode = #tpu.pipeline_mode<synchronous>, transform_indices = @transform_9, window_bounds = array<i64: 100, 10>}, {pipeline_mode = #tpu.pipeline_mode<synchronous>, transform_indices = @transform_10, window_bounds = array<i64: 1, 10>}, {pipeline_mode = #tpu.pipeline_mode<synchronous>, transform_indices = @transform_11, window_bounds = array<i64: 2, 10>}]} {
    %c0 = arith.constant 0 : index
    %c0_0 = arith.constant 0 : index
    %0 = vector.load %arg3[%c0, %c0_0] : memref<1x65xf32, #tpu.memory_space<vmem>>, vector<1x65xf32>
    %c0_1 = arith.constant 0 : index
    %c0_2 = arith.constant 0 : index
    %1 = vector.load %arg5[%c0_1, %c0_2] : memref<1x108xf32, #tpu.memory_space<vmem>>, vector<1x108xf32>
    %c0_3 = arith.constant 0 : index
    %c0_4 = arith.constant 0 : index
    %2 = vector.load %arg6[%c0_3, %c0_4] : memref<1x108xf32, #tpu.memory_space<vmem>>, vector<1x108xf32>
    %c0_5 = arith.constant 0 : index
    %c0_6 = arith.constant 0 : index
    %3 = vector.load %arg7[%c0_5, %c0_6] : memref<1x108xf32, #tpu.memory_space<vmem>>, vector<1x108xf32>
    %c0_7 = arith.constant 0 : index
    %c0_8 = arith.constant 0 : index
    %4 = vector.load %arg9[%c0_7, %c0_8] : memref<1x100xf32, #tpu.memory_space<vmem>>, vector<1x100xf32>
    %c0_9 = arith.constant 0 : index
    %c0_10 = arith.constant 0 : index
    %5 = vector.load %arg11[%c0_9, %c0_10] : memref<1x10xf32, #tpu.memory_space<vmem>>, vector<1x10xf32>
    %c0_11 = arith.constant 0 : index
    %c0_12 = arith.constant 0 : index
    %c0_13 = arith.constant 0 : index
    %6 = vector.load %arg1[%c0_11, %c0_12, %c0_13] : memref<2x14x56xbf16, #tpu.memory_space<vmem>>, vector<1x14x56xbf16>
    %7 = vector.shape_cast %6 : vector<1x14x56xbf16> to vector<14x56xbf16>
    %8 = vector.extract_strided_slice %7 {offsets = [0, 0], sizes = [13, 56], strides = [1, 1]} : vector<14x56xbf16> to vector<13x56xbf16>
    %c0_14 = arith.constant 0 : index
    %c0_15 = arith.constant 0 : index
    %c0_16 = arith.constant 0 : index
    %9 = vector.load %arg2[%c0_14, %c0_15, %c0_16] : memref<2x56x260xbf16, #tpu.memory_space<vmem>>, vector<1x56x260xbf16>
    %10 = vector.shape_cast %9 : vector<1x56x260xbf16> to vector<56x260xbf16>
    %cst = arith.constant dense<0.000000e+00> : vector<13x260xf32>
    %11 = tpu.matmul %8, %10, %cst {dimension_numbers = #tpu.dot_dimension_numbers<[1], [0], [0], [1], [0, 0, 1, 1], [], []>} : vector<13x56xbf16>, vector<56x260xbf16>, vector<13x260xf32> -> vector<13x260xf32>
    %12 = vector.extract_strided_slice %7 {offsets = [1, 0], sizes = [13, 56], strides = [1, 1]} : vector<14x56xbf16> to vector<13x56xbf16>
    %c1 = arith.constant 1 : index
    %c0_17 = arith.constant 0 : index
    %c0_18 = arith.constant 0 : index
    %13 = vector.load %arg2[%c1, %c0_17, %c0_18] : memref<2x56x260xbf16, #tpu.memory_space<vmem>>, vector<1x56x260xbf16>
    %14 = vector.shape_cast %13 : vector<1x56x260xbf16> to vector<56x260xbf16>
    %cst_19 = arith.constant dense<0.000000e+00> : vector<13x260xf32>
    %15 = tpu.matmul %12, %14, %cst_19 {dimension_numbers = #tpu.dot_dimension_numbers<[1], [0], [0], [1], [0, 0, 1, 1], [], []>} : vector<13x56xbf16>, vector<56x260xbf16>, vector<13x260xf32> -> vector<13x260xf32>
    %16 = arith.addf %11, %15 : vector<13x260xf32>
    %17 = vector.extract_strided_slice %16 {offsets = [0, 0], sizes = [13, 65], strides = [1, 1]} : vector<13x260xf32> to vector<13x65xf32>
    %18 = vector.extract_strided_slice %16 {offsets = [0, 65], sizes = [13, 65], strides = [1, 1]} : vector<13x260xf32> to vector<13x65xf32>
    %19 = arith.maximumf %17, %18 : vector<13x65xf32>
    %20 = vector.extract_strided_slice %16 {offsets = [0, 130], sizes = [13, 65], strides = [1, 1]} : vector<13x260xf32> to vector<13x65xf32>
    %21 = vector.extract_strided_slice %16 {offsets = [0, 195], sizes = [13, 65], strides = [1, 1]} : vector<13x260xf32> to vector<13x65xf32>
    %22 = arith.maximumf %20, %21 : vector<13x65xf32>
    %23 = arith.maximumf %19, %22 : vector<13x65xf32>
    %24 = vector.broadcast %0 : vector<1x65xf32> to vector<13x65xf32>
    %25 = arith.addf %23, %24 : vector<13x65xf32>
    %cst_20 = arith.constant 0.000000e+00 : f32
    %26 = vector.broadcast %cst_20 : f32 to vector<13x65xf32>
    %27 = arith.maximumf %25, %26 : vector<13x65xf32>
    %28 = arith.truncf %27 : vector<13x65xf32> to vector<13x65xbf16>
    %29 = vector.extract_strided_slice %28 {offsets = [0, 0], sizes = [9, 65], strides = [1, 1]} : vector<13x65xbf16> to vector<9x65xbf16>
    %c0_21 = arith.constant 0 : index
    %c0_22 = arith.constant 0 : index
    %c0_23 = arith.constant 0 : index
    %30 = vector.load %arg4[%c0_21, %c0_22, %c0_23] : memref<5x65x108xbf16, #tpu.memory_space<vmem>>, vector<1x65x108xbf16>
    %31 = vector.shape_cast %30 : vector<1x65x108xbf16> to vector<65x108xbf16>
    %cst_24 = arith.constant dense<0.000000e+00> : vector<9x108xf32>
    %32 = tpu.matmul %29, %31, %cst_24 {dimension_numbers = #tpu.dot_dimension_numbers<[1], [0], [0], [1], [0, 0, 1, 1], [], []>} : vector<9x65xbf16>, vector<65x108xbf16>, vector<9x108xf32> -> vector<9x108xf32>
    %33 = vector.extract_strided_slice %28 {offsets = [1, 0], sizes = [9, 65], strides = [1, 1]} : vector<13x65xbf16> to vector<9x65xbf16>
    %c1_25 = arith.constant 1 : index
    %c0_26 = arith.constant 0 : index
    %c0_27 = arith.constant 0 : index
    %34 = vector.load %arg4[%c1_25, %c0_26, %c0_27] : memref<5x65x108xbf16, #tpu.memory_space<vmem>>, vector<1x65x108xbf16>
    %35 = vector.shape_cast %34 : vector<1x65x108xbf16> to vector<65x108xbf16>
    %cst_28 = arith.constant dense<0.000000e+00> : vector<9x108xf32>
    %36 = tpu.matmul %33, %35, %cst_28 {dimension_numbers = #tpu.dot_dimension_numbers<[1], [0], [0], [1], [0, 0, 1, 1], [], []>} : vector<9x65xbf16>, vector<65x108xbf16>, vector<9x108xf32> -> vector<9x108xf32>
    %37 = arith.addf %32, %36 : vector<9x108xf32>
    %38 = vector.extract_strided_slice %28 {offsets = [2, 0], sizes = [9, 65], strides = [1, 1]} : vector<13x65xbf16> to vector<9x65xbf16>
    %c2 = arith.constant 2 : index
    %c0_29 = arith.constant 0 : index
    %c0_30 = arith.constant 0 : index
    %39 = vector.load %arg4[%c2, %c0_29, %c0_30] : memref<5x65x108xbf16, #tpu.memory_space<vmem>>, vector<1x65x108xbf16>
    %40 = vector.shape_cast %39 : vector<1x65x108xbf16> to vector<65x108xbf16>
    %cst_31 = arith.constant dense<0.000000e+00> : vector<9x108xf32>
    %41 = tpu.matmul %38, %40, %cst_31 {dimension_numbers = #tpu.dot_dimension_numbers<[1], [0], [0], [1], [0, 0, 1, 1], [], []>} : vector<9x65xbf16>, vector<65x108xbf16>, vector<9x108xf32> -> vector<9x108xf32>
    %42 = arith.addf %37, %41 : vector<9x108xf32>
    %43 = vector.extract_strided_slice %28 {offsets = [3, 0], sizes = [9, 65], strides = [1, 1]} : vector<13x65xbf16> to vector<9x65xbf16>
    %c3 = arith.constant 3 : index
    %c0_32 = arith.constant 0 : index
    %c0_33 = arith.constant 0 : index
    %44 = vector.load %arg4[%c3, %c0_32, %c0_33] : memref<5x65x108xbf16, #tpu.memory_space<vmem>>, vector<1x65x108xbf16>
    %45 = vector.shape_cast %44 : vector<1x65x108xbf16> to vector<65x108xbf16>
    %cst_34 = arith.constant dense<0.000000e+00> : vector<9x108xf32>
    %46 = tpu.matmul %43, %45, %cst_34 {dimension_numbers = #tpu.dot_dimension_numbers<[1], [0], [0], [1], [0, 0, 1, 1], [], []>} : vector<9x65xbf16>, vector<65x108xbf16>, vector<9x108xf32> -> vector<9x108xf32>
    %47 = arith.addf %42, %46 : vector<9x108xf32>
    %48 = vector.extract_strided_slice %28 {offsets = [4, 0], sizes = [9, 65], strides = [1, 1]} : vector<13x65xbf16> to vector<9x65xbf16>
    %c4 = arith.constant 4 : index
    %c0_35 = arith.constant 0 : index
    %c0_36 = arith.constant 0 : index
    %49 = vector.load %arg4[%c4, %c0_35, %c0_36] : memref<5x65x108xbf16, #tpu.memory_space<vmem>>, vector<1x65x108xbf16>
    %50 = vector.shape_cast %49 : vector<1x65x108xbf16> to vector<65x108xbf16>
    %cst_37 = arith.constant dense<0.000000e+00> : vector<9x108xf32>
    %51 = tpu.matmul %48, %50, %cst_37 {dimension_numbers = #tpu.dot_dimension_numbers<[1], [0], [0], [1], [0, 0, 1, 1], [], []>} : vector<9x65xbf16>, vector<65x108xbf16>, vector<9x108xf32> -> vector<9x108xf32>
    %52 = arith.addf %47, %51 : vector<9x108xf32>
    %53 = vector.broadcast %1 : vector<1x108xf32> to vector<9x108xf32>
    %54 = arith.addf %52, %53 : vector<9x108xf32>
    %cst_38 = arith.constant 0.000000e+00 : f32
    %55 = vector.broadcast %cst_38 : f32 to vector<9x108xf32>
    %56 = arith.maximumf %54, %55 : vector<9x108xf32>
    %57 = vector.extract_strided_slice %56 {offsets = [0, 0], sizes = [9, 36], strides = [1, 1]} : vector<9x108xf32> to vector<9x36xf32>
    %cst_39 = arith.constant dense<0.000000e+00> : vector<9xf32>
    %58 = vector.multi_reduction <add>, %57, %cst_39 [1] : vector<9x36xf32> to vector<9xf32>
    %59 = vector.shape_cast %58 : vector<9xf32> to vector<9x1xf32>
    %cst_40 = arith.constant dense<0.000000e+00> : vector<1xf32>
    %60 = vector.multi_reduction <add>, %59, %cst_40 [0] : vector<9x1xf32> to vector<1xf32>
    %61 = vector.shape_cast %60 : vector<1xf32> to vector<1x1xf32>
    %cst_41 = arith.constant 0.00308641978 : f32
    %62 = vector.broadcast %cst_41 : f32 to vector<1x1xf32>
    %63 = arith.mulf %61, %62 : vector<1x1xf32>
    %64 = vector.broadcast %63 : vector<1x1xf32> to vector<9x36xf32>
    %65 = arith.subf %57, %64 : vector<9x36xf32>
    %66 = arith.mulf %65, %65 : vector<9x36xf32>
    %cst_42 = arith.constant dense<0.000000e+00> : vector<9xf32>
    %67 = vector.multi_reduction <add>, %66, %cst_42 [1] : vector<9x36xf32> to vector<9xf32>
    %68 = vector.shape_cast %67 : vector<9xf32> to vector<9x1xf32>
    %cst_43 = arith.constant dense<0.000000e+00> : vector<1xf32>
    %69 = vector.multi_reduction <add>, %68, %cst_43 [0] : vector<9x1xf32> to vector<1xf32>
    %70 = vector.shape_cast %69 : vector<1xf32> to vector<1x1xf32>
    %cst_44 = arith.constant 0.00308641978 : f32
    %71 = vector.broadcast %cst_44 : f32 to vector<1x1xf32>
    %72 = arith.mulf %70, %71 : vector<1x1xf32>
    %cst_45 = arith.constant 9.99999974E-6 : f32
    %73 = vector.broadcast %cst_45 : f32 to vector<1x1xf32>
    %74 = arith.addf %72, %73 : vector<1x1xf32>
    %75 = math.rsqrt %74 : vector<1x1xf32>
    %76 = vector.broadcast %75 : vector<1x1xf32> to vector<9x36xf32>
    %77 = arith.mulf %65, %76 : vector<9x36xf32>
    %78 = vector.extract_strided_slice %56 {offsets = [0, 36], sizes = [9, 36], strides = [1, 1]} : vector<9x108xf32> to vector<9x36xf32>
    %cst_46 = arith.constant dense<0.000000e+00> : vector<9xf32>
    %79 = vector.multi_reduction <add>, %78, %cst_46 [1] : vector<9x36xf32> to vector<9xf32>
    %80 = vector.shape_cast %79 : vector<9xf32> to vector<9x1xf32>
    %cst_47 = arith.constant dense<0.000000e+00> : vector<1xf32>
    %81 = vector.multi_reduction <add>, %80, %cst_47 [0] : vector<9x1xf32> to vector<1xf32>
    %82 = vector.shape_cast %81 : vector<1xf32> to vector<1x1xf32>
    %cst_48 = arith.constant 0.00308641978 : f32
    %83 = vector.broadcast %cst_48 : f32 to vector<1x1xf32>
    %84 = arith.mulf %82, %83 : vector<1x1xf32>
    %85 = vector.broadcast %84 : vector<1x1xf32> to vector<9x36xf32>
    %86 = arith.subf %78, %85 : vector<9x36xf32>
    %87 = arith.mulf %86, %86 : vector<9x36xf32>
    %cst_49 = arith.constant dense<0.000000e+00> : vector<9xf32>
    %88 = vector.multi_reduction <add>, %87, %cst_49 [1] : vector<9x36xf32> to vector<9xf32>
    %89 = vector.shape_cast %88 : vector<9xf32> to vector<9x1xf32>
    %cst_50 = arith.constant dense<0.000000e+00> : vector<1xf32>
    %90 = vector.multi_reduction <add>, %89, %cst_50 [0] : vector<9x1xf32> to vector<1xf32>
    %91 = vector.shape_cast %90 : vector<1xf32> to vector<1x1xf32>
    %cst_51 = arith.constant 0.00308641978 : f32
    %92 = vector.broadcast %cst_51 : f32 to vector<1x1xf32>
    %93 = arith.mulf %91, %92 : vector<1x1xf32>
    %cst_52 = arith.constant 9.99999974E-6 : f32
    %94 = vector.broadcast %cst_52 : f32 to vector<1x1xf32>
    %95 = arith.addf %93, %94 : vector<1x1xf32>
    %96 = math.rsqrt %95 : vector<1x1xf32>
    %97 = vector.broadcast %96 : vector<1x1xf32> to vector<9x36xf32>
    %98 = arith.mulf %86, %97 : vector<9x36xf32>
    %99 = vector.extract_strided_slice %56 {offsets = [0, 72], sizes = [9, 36], strides = [1, 1]} : vector<9x108xf32> to vector<9x36xf32>
    %cst_53 = arith.constant dense<0.000000e+00> : vector<9xf32>
    %100 = vector.multi_reduction <add>, %99, %cst_53 [1] : vector<9x36xf32> to vector<9xf32>
    %101 = vector.shape_cast %100 : vector<9xf32> to vector<9x1xf32>
    %cst_54 = arith.constant dense<0.000000e+00> : vector<1xf32>
    %102 = vector.multi_reduction <add>, %101, %cst_54 [0] : vector<9x1xf32> to vector<1xf32>
    %103 = vector.shape_cast %102 : vector<1xf32> to vector<1x1xf32>
    %cst_55 = arith.constant 0.00308641978 : f32
    %104 = vector.broadcast %cst_55 : f32 to vector<1x1xf32>
    %105 = arith.mulf %103, %104 : vector<1x1xf32>
    %106 = vector.broadcast %105 : vector<1x1xf32> to vector<9x36xf32>
    %107 = arith.subf %99, %106 : vector<9x36xf32>
    %108 = arith.mulf %107, %107 : vector<9x36xf32>
    %cst_56 = arith.constant dense<0.000000e+00> : vector<9xf32>
    %109 = vector.multi_reduction <add>, %108, %cst_56 [1] : vector<9x36xf32> to vector<9xf32>
    %110 = vector.shape_cast %109 : vector<9xf32> to vector<9x1xf32>
    %cst_57 = arith.constant dense<0.000000e+00> : vector<1xf32>
    %111 = vector.multi_reduction <add>, %110, %cst_57 [0] : vector<9x1xf32> to vector<1xf32>
    %112 = vector.shape_cast %111 : vector<1xf32> to vector<1x1xf32>
    %cst_58 = arith.constant 0.00308641978 : f32
    %113 = vector.broadcast %cst_58 : f32 to vector<1x1xf32>
    %114 = arith.mulf %112, %113 : vector<1x1xf32>
    %cst_59 = arith.constant 9.99999974E-6 : f32
    %115 = vector.broadcast %cst_59 : f32 to vector<1x1xf32>
    %116 = arith.addf %114, %115 : vector<1x1xf32>
    %117 = math.rsqrt %116 : vector<1x1xf32>
    %118 = vector.broadcast %117 : vector<1x1xf32> to vector<9x36xf32>
    %119 = arith.mulf %107, %118 : vector<9x36xf32>
    %120 = tpu.concatenate %77, %98, %119 in 1 : vector<9x36xf32>, vector<9x36xf32>, vector<9x36xf32> -> vector<9x108xf32>
    %121 = vector.broadcast %2 : vector<1x108xf32> to vector<9x108xf32>
    %122 = arith.mulf %120, %121 : vector<9x108xf32>
    %123 = vector.broadcast %3 : vector<1x108xf32> to vector<9x108xf32>
    %124 = arith.addf %122, %123 : vector<9x108xf32>
    %125 = vector.extract_strided_slice %124 {offsets = [0, 0], sizes = [1, 108], strides = [1, 1]} : vector<9x108xf32> to vector<1x108xf32>
    %126 = vector.extract_strided_slice %124 {offsets = [1, 0], sizes = [1, 108], strides = [1, 1]} : vector<9x108xf32> to vector<1x108xf32>
    %127 = vector.extract_strided_slice %124 {offsets = [2, 0], sizes = [1, 108], strides = [1, 1]} : vector<9x108xf32> to vector<1x108xf32>
    %128 = vector.extract_strided_slice %124 {offsets = [3, 0], sizes = [1, 108], strides = [1, 1]} : vector<9x108xf32> to vector<1x108xf32>
    %129 = vector.extract_strided_slice %124 {offsets = [4, 0], sizes = [1, 108], strides = [1, 1]} : vector<9x108xf32> to vector<1x108xf32>
    %130 = vector.extract_strided_slice %124 {offsets = [5, 0], sizes = [1, 108], strides = [1, 1]} : vector<9x108xf32> to vector<1x108xf32>
    %131 = vector.extract_strided_slice %124 {offsets = [6, 0], sizes = [1, 108], strides = [1, 1]} : vector<9x108xf32> to vector<1x108xf32>
    %132 = vector.extract_strided_slice %124 {offsets = [7, 0], sizes = [1, 108], strides = [1, 1]} : vector<9x108xf32> to vector<1x108xf32>
    %133 = vector.extract_strided_slice %124 {offsets = [8, 0], sizes = [1, 108], strides = [1, 1]} : vector<9x108xf32> to vector<1x108xf32>
    %134 = tpu.concatenate %125, %126, %127, %128, %129, %130, %131, %132, %133 in 1 : vector<1x108xf32>, vector<1x108xf32>, vector<1x108xf32>, vector<1x108xf32>, vector<1x108xf32>, vector<1x108xf32>, vector<1x108xf32>, vector<1x108xf32>, vector<1x108xf32> -> vector<1x972xf32>
    %135 = arith.truncf %134 : vector<1x972xf32> to vector<1x972xbf16>
    %c0_60 = arith.constant 0 : index
    %c0_61 = arith.constant 0 : index
    %136 = vector.load %arg8[%c0_60, %c0_61] : memref<972x100xbf16, #tpu.memory_space<vmem>>, vector<972x100xbf16>
    %cst_62 = arith.constant dense<0.000000e+00> : vector<1x100xf32>
    %137 = tpu.matmul %135, %136, %cst_62 {dimension_numbers = #tpu.dot_dimension_numbers<[1], [0], [0], [1], [0, 0, 1, 1], [], []>} : vector<1x972xbf16>, vector<972x100xbf16>, vector<1x100xf32> -> vector<1x100xf32>
    %138 = arith.addf %137, %4 : vector<1x100xf32>
    %cst_63 = arith.constant 0.000000e+00 : f32
    %139 = vector.broadcast %cst_63 : f32 to vector<1x100xf32>
    %140 = arith.maximumf %138, %139 : vector<1x100xf32>
    %141 = arith.truncf %140 : vector<1x100xf32> to vector<1x100xbf16>
    %c0_64 = arith.constant 0 : index
    %c0_65 = arith.constant 0 : index
    %142 = vector.load %arg10[%c0_64, %c0_65] : memref<100x10xbf16, #tpu.memory_space<vmem>>, vector<100x10xbf16>
    %cst_66 = arith.constant dense<0.000000e+00> : vector<1x10xf32>
    %143 = tpu.matmul %141, %142, %cst_66 {dimension_numbers = #tpu.dot_dimension_numbers<[1], [0], [0], [1], [0, 0, 1, 1], [], []>} : vector<1x100xbf16>, vector<100x10xbf16>, vector<1x10xf32> -> vector<1x10xf32>
    %144 = arith.addf %143, %5 : vector<1x10xf32>
    %c1_67 = arith.constant 1 : index
    %c0_68 = arith.constant 0 : index
    %c0_69 = arith.constant 0 : index
    %145 = vector.load %arg1[%c1_67, %c0_68, %c0_69] : memref<2x14x56xbf16, #tpu.memory_space<vmem>>, vector<1x14x56xbf16>
    %146 = vector.shape_cast %145 : vector<1x14x56xbf16> to vector<14x56xbf16>
    %147 = vector.extract_strided_slice %146 {offsets = [0, 0], sizes = [13, 56], strides = [1, 1]} : vector<14x56xbf16> to vector<13x56xbf16>
    %c0_70 = arith.constant 0 : index
    %c0_71 = arith.constant 0 : index
    %c0_72 = arith.constant 0 : index
    %148 = vector.load %arg2[%c0_70, %c0_71, %c0_72] : memref<2x56x260xbf16, #tpu.memory_space<vmem>>, vector<1x56x260xbf16>
    %149 = vector.shape_cast %148 : vector<1x56x260xbf16> to vector<56x260xbf16>
    %cst_73 = arith.constant dense<0.000000e+00> : vector<13x260xf32>
    %150 = tpu.matmul %147, %149, %cst_73 {dimension_numbers = #tpu.dot_dimension_numbers<[1], [0], [0], [1], [0, 0, 1, 1], [], []>} : vector<13x56xbf16>, vector<56x260xbf16>, vector<13x260xf32> -> vector<13x260xf32>
    %151 = vector.extract_strided_slice %146 {offsets = [1, 0], sizes = [13, 56], strides = [1, 1]} : vector<14x56xbf16> to vector<13x56xbf16>
    %c1_74 = arith.constant 1 : index
    %c0_75 = arith.constant 0 : index
    %c0_76 = arith.constant 0 : index
    %152 = vector.load %arg2[%c1_74, %c0_75, %c0_76] : memref<2x56x260xbf16, #tpu.memory_space<vmem>>, vector<1x56x260xbf16>
    %153 = vector.shape_cast %152 : vector<1x56x260xbf16> to vector<56x260xbf16>
    %cst_77 = arith.constant dense<0.000000e+00> : vector<13x260xf32>
    %154 = tpu.matmul %151, %153, %cst_77 {dimension_numbers = #tpu.dot_dimension_numbers<[1], [0], [0], [1], [0, 0, 1, 1], [], []>} : vector<13x56xbf16>, vector<56x260xbf16>, vector<13x260xf32> -> vector<13x260xf32>
    %155 = arith.addf %150, %154 : vector<13x260xf32>
    %156 = vector.extract_strided_slice %155 {offsets = [0, 0], sizes = [13, 65], strides = [1, 1]} : vector<13x260xf32> to vector<13x65xf32>
    %157 = vector.extract_strided_slice %155 {offsets = [0, 65], sizes = [13, 65], strides = [1, 1]} : vector<13x260xf32> to vector<13x65xf32>
    %158 = arith.maximumf %156, %157 : vector<13x65xf32>
    %159 = vector.extract_strided_slice %155 {offsets = [0, 130], sizes = [13, 65], strides = [1, 1]} : vector<13x260xf32> to vector<13x65xf32>
    %160 = vector.extract_strided_slice %155 {offsets = [0, 195], sizes = [13, 65], strides = [1, 1]} : vector<13x260xf32> to vector<13x65xf32>
    %161 = arith.maximumf %159, %160 : vector<13x65xf32>
    %162 = arith.maximumf %158, %161 : vector<13x65xf32>
    %163 = vector.broadcast %0 : vector<1x65xf32> to vector<13x65xf32>
    %164 = arith.addf %162, %163 : vector<13x65xf32>
    %cst_78 = arith.constant 0.000000e+00 : f32
    %165 = vector.broadcast %cst_78 : f32 to vector<13x65xf32>
    %166 = arith.maximumf %164, %165 : vector<13x65xf32>
    %167 = arith.truncf %166 : vector<13x65xf32> to vector<13x65xbf16>
    %168 = vector.extract_strided_slice %167 {offsets = [0, 0], sizes = [9, 65], strides = [1, 1]} : vector<13x65xbf16> to vector<9x65xbf16>
    %c0_79 = arith.constant 0 : index
    %c0_80 = arith.constant 0 : index
    %c0_81 = arith.constant 0 : index
    %169 = vector.load %arg4[%c0_79, %c0_80, %c0_81] : memref<5x65x108xbf16, #tpu.memory_space<vmem>>, vector<1x65x108xbf16>
    %170 = vector.shape_cast %169 : vector<1x65x108xbf16> to vector<65x108xbf16>
    %cst_82 = arith.constant dense<0.000000e+00> : vector<9x108xf32>
    %171 = tpu.matmul %168, %170, %cst_82 {dimension_numbers = #tpu.dot_dimension_numbers<[1], [0], [0], [1], [0, 0, 1, 1], [], []>} : vector<9x65xbf16>, vector<65x108xbf16>, vector<9x108xf32> -> vector<9x108xf32>
    %172 = vector.extract_strided_slice %167 {offsets = [1, 0], sizes = [9, 65], strides = [1, 1]} : vector<13x65xbf16> to vector<9x65xbf16>
    %c1_83 = arith.constant 1 : index
    %c0_84 = arith.constant 0 : index
    %c0_85 = arith.constant 0 : index
    %173 = vector.load %arg4[%c1_83, %c0_84, %c0_85] : memref<5x65x108xbf16, #tpu.memory_space<vmem>>, vector<1x65x108xbf16>
    %174 = vector.shape_cast %173 : vector<1x65x108xbf16> to vector<65x108xbf16>
    %cst_86 = arith.constant dense<0.000000e+00> : vector<9x108xf32>
    %175 = tpu.matmul %172, %174, %cst_86 {dimension_numbers = #tpu.dot_dimension_numbers<[1], [0], [0], [1], [0, 0, 1, 1], [], []>} : vector<9x65xbf16>, vector<65x108xbf16>, vector<9x108xf32> -> vector<9x108xf32>
    %176 = arith.addf %171, %175 : vector<9x108xf32>
    %177 = vector.extract_strided_slice %167 {offsets = [2, 0], sizes = [9, 65], strides = [1, 1]} : vector<13x65xbf16> to vector<9x65xbf16>
    %c2_87 = arith.constant 2 : index
    %c0_88 = arith.constant 0 : index
    %c0_89 = arith.constant 0 : index
    %178 = vector.load %arg4[%c2_87, %c0_88, %c0_89] : memref<5x65x108xbf16, #tpu.memory_space<vmem>>, vector<1x65x108xbf16>
    %179 = vector.shape_cast %178 : vector<1x65x108xbf16> to vector<65x108xbf16>
    %cst_90 = arith.constant dense<0.000000e+00> : vector<9x108xf32>
    %180 = tpu.matmul %177, %179, %cst_90 {dimension_numbers = #tpu.dot_dimension_numbers<[1], [0], [0], [1], [0, 0, 1, 1], [], []>} : vector<9x65xbf16>, vector<65x108xbf16>, vector<9x108xf32> -> vector<9x108xf32>
    %181 = arith.addf %176, %180 : vector<9x108xf32>
    %182 = vector.extract_strided_slice %167 {offsets = [3, 0], sizes = [9, 65], strides = [1, 1]} : vector<13x65xbf16> to vector<9x65xbf16>
    %c3_91 = arith.constant 3 : index
    %c0_92 = arith.constant 0 : index
    %c0_93 = arith.constant 0 : index
    %183 = vector.load %arg4[%c3_91, %c0_92, %c0_93] : memref<5x65x108xbf16, #tpu.memory_space<vmem>>, vector<1x65x108xbf16>
    %184 = vector.shape_cast %183 : vector<1x65x108xbf16> to vector<65x108xbf16>
    %cst_94 = arith.constant dense<0.000000e+00> : vector<9x108xf32>
    %185 = tpu.matmul %182, %184, %cst_94 {dimension_numbers = #tpu.dot_dimension_numbers<[1], [0], [0], [1], [0, 0, 1, 1], [], []>} : vector<9x65xbf16>, vector<65x108xbf16>, vector<9x108xf32> -> vector<9x108xf32>
    %186 = arith.addf %181, %185 : vector<9x108xf32>
    %187 = vector.extract_strided_slice %167 {offsets = [4, 0], sizes = [9, 65], strides = [1, 1]} : vector<13x65xbf16> to vector<9x65xbf16>
    %c4_95 = arith.constant 4 : index
    %c0_96 = arith.constant 0 : index
    %c0_97 = arith.constant 0 : index
    %188 = vector.load %arg4[%c4_95, %c0_96, %c0_97] : memref<5x65x108xbf16, #tpu.memory_space<vmem>>, vector<1x65x108xbf16>
    %189 = vector.shape_cast %188 : vector<1x65x108xbf16> to vector<65x108xbf16>
    %cst_98 = arith.constant dense<0.000000e+00> : vector<9x108xf32>
    %190 = tpu.matmul %187, %189, %cst_98 {dimension_numbers = #tpu.dot_dimension_numbers<[1], [0], [0], [1], [0, 0, 1, 1], [], []>} : vector<9x65xbf16>, vector<65x108xbf16>, vector<9x108xf32> -> vector<9x108xf32>
    %191 = arith.addf %186, %190 : vector<9x108xf32>
    %192 = vector.broadcast %1 : vector<1x108xf32> to vector<9x108xf32>
    %193 = arith.addf %191, %192 : vector<9x108xf32>
    %cst_99 = arith.constant 0.000000e+00 : f32
    %194 = vector.broadcast %cst_99 : f32 to vector<9x108xf32>
    %195 = arith.maximumf %193, %194 : vector<9x108xf32>
    %196 = vector.extract_strided_slice %195 {offsets = [0, 0], sizes = [9, 36], strides = [1, 1]} : vector<9x108xf32> to vector<9x36xf32>
    %cst_100 = arith.constant dense<0.000000e+00> : vector<9xf32>
    %197 = vector.multi_reduction <add>, %196, %cst_100 [1] : vector<9x36xf32> to vector<9xf32>
    %198 = vector.shape_cast %197 : vector<9xf32> to vector<9x1xf32>
    %cst_101 = arith.constant dense<0.000000e+00> : vector<1xf32>
    %199 = vector.multi_reduction <add>, %198, %cst_101 [0] : vector<9x1xf32> to vector<1xf32>
    %200 = vector.shape_cast %199 : vector<1xf32> to vector<1x1xf32>
    %cst_102 = arith.constant 0.00308641978 : f32
    %201 = vector.broadcast %cst_102 : f32 to vector<1x1xf32>
    %202 = arith.mulf %200, %201 : vector<1x1xf32>
    %203 = vector.broadcast %202 : vector<1x1xf32> to vector<9x36xf32>
    %204 = arith.subf %196, %203 : vector<9x36xf32>
    %205 = arith.mulf %204, %204 : vector<9x36xf32>
    %cst_103 = arith.constant dense<0.000000e+00> : vector<9xf32>
    %206 = vector.multi_reduction <add>, %205, %cst_103 [1] : vector<9x36xf32> to vector<9xf32>
    %207 = vector.shape_cast %206 : vector<9xf32> to vector<9x1xf32>
    %cst_104 = arith.constant dense<0.000000e+00> : vector<1xf32>
    %208 = vector.multi_reduction <add>, %207, %cst_104 [0] : vector<9x1xf32> to vector<1xf32>
    %209 = vector.shape_cast %208 : vector<1xf32> to vector<1x1xf32>
    %cst_105 = arith.constant 0.00308641978 : f32
    %210 = vector.broadcast %cst_105 : f32 to vector<1x1xf32>
    %211 = arith.mulf %209, %210 : vector<1x1xf32>
    %cst_106 = arith.constant 9.99999974E-6 : f32
    %212 = vector.broadcast %cst_106 : f32 to vector<1x1xf32>
    %213 = arith.addf %211, %212 : vector<1x1xf32>
    %214 = math.rsqrt %213 : vector<1x1xf32>
    %215 = vector.broadcast %214 : vector<1x1xf32> to vector<9x36xf32>
    %216 = arith.mulf %204, %215 : vector<9x36xf32>
    %217 = vector.extract_strided_slice %195 {offsets = [0, 36], sizes = [9, 36], strides = [1, 1]} : vector<9x108xf32> to vector<9x36xf32>
    %cst_107 = arith.constant dense<0.000000e+00> : vector<9xf32>
    %218 = vector.multi_reduction <add>, %217, %cst_107 [1] : vector<9x36xf32> to vector<9xf32>
    %219 = vector.shape_cast %218 : vector<9xf32> to vector<9x1xf32>
    %cst_108 = arith.constant dense<0.000000e+00> : vector<1xf32>
    %220 = vector.multi_reduction <add>, %219, %cst_108 [0] : vector<9x1xf32> to vector<1xf32>
    %221 = vector.shape_cast %220 : vector<1xf32> to vector<1x1xf32>
    %cst_109 = arith.constant 0.00308641978 : f32
    %222 = vector.broadcast %cst_109 : f32 to vector<1x1xf32>
    %223 = arith.mulf %221, %222 : vector<1x1xf32>
    %224 = vector.broadcast %223 : vector<1x1xf32> to vector<9x36xf32>
    %225 = arith.subf %217, %224 : vector<9x36xf32>
    %226 = arith.mulf %225, %225 : vector<9x36xf32>
    %cst_110 = arith.constant dense<0.000000e+00> : vector<9xf32>
    %227 = vector.multi_reduction <add>, %226, %cst_110 [1] : vector<9x36xf32> to vector<9xf32>
    %228 = vector.shape_cast %227 : vector<9xf32> to vector<9x1xf32>
    %cst_111 = arith.constant dense<0.000000e+00> : vector<1xf32>
    %229 = vector.multi_reduction <add>, %228, %cst_111 [0] : vector<9x1xf32> to vector<1xf32>
    %230 = vector.shape_cast %229 : vector<1xf32> to vector<1x1xf32>
    %cst_112 = arith.constant 0.00308641978 : f32
    %231 = vector.broadcast %cst_112 : f32 to vector<1x1xf32>
    %232 = arith.mulf %230, %231 : vector<1x1xf32>
    %cst_113 = arith.constant 9.99999974E-6 : f32
    %233 = vector.broadcast %cst_113 : f32 to vector<1x1xf32>
    %234 = arith.addf %232, %233 : vector<1x1xf32>
    %235 = math.rsqrt %234 : vector<1x1xf32>
    %236 = vector.broadcast %235 : vector<1x1xf32> to vector<9x36xf32>
    %237 = arith.mulf %225, %236 : vector<9x36xf32>
    %238 = vector.extract_strided_slice %195 {offsets = [0, 72], sizes = [9, 36], strides = [1, 1]} : vector<9x108xf32> to vector<9x36xf32>
    %cst_114 = arith.constant dense<0.000000e+00> : vector<9xf32>
    %239 = vector.multi_reduction <add>, %238, %cst_114 [1] : vector<9x36xf32> to vector<9xf32>
    %240 = vector.shape_cast %239 : vector<9xf32> to vector<9x1xf32>
    %cst_115 = arith.constant dense<0.000000e+00> : vector<1xf32>
    %241 = vector.multi_reduction <add>, %240, %cst_115 [0] : vector<9x1xf32> to vector<1xf32>
    %242 = vector.shape_cast %241 : vector<1xf32> to vector<1x1xf32>
    %cst_116 = arith.constant 0.00308641978 : f32
    %243 = vector.broadcast %cst_116 : f32 to vector<1x1xf32>
    %244 = arith.mulf %242, %243 : vector<1x1xf32>
    %245 = vector.broadcast %244 : vector<1x1xf32> to vector<9x36xf32>
    %246 = arith.subf %238, %245 : vector<9x36xf32>
    %247 = arith.mulf %246, %246 : vector<9x36xf32>
    %cst_117 = arith.constant dense<0.000000e+00> : vector<9xf32>
    %248 = vector.multi_reduction <add>, %247, %cst_117 [1] : vector<9x36xf32> to vector<9xf32>
    %249 = vector.shape_cast %248 : vector<9xf32> to vector<9x1xf32>
    %cst_118 = arith.constant dense<0.000000e+00> : vector<1xf32>
    %250 = vector.multi_reduction <add>, %249, %cst_118 [0] : vector<9x1xf32> to vector<1xf32>
    %251 = vector.shape_cast %250 : vector<1xf32> to vector<1x1xf32>
    %cst_119 = arith.constant 0.00308641978 : f32
    %252 = vector.broadcast %cst_119 : f32 to vector<1x1xf32>
    %253 = arith.mulf %251, %252 : vector<1x1xf32>
    %cst_120 = arith.constant 9.99999974E-6 : f32
    %254 = vector.broadcast %cst_120 : f32 to vector<1x1xf32>
    %255 = arith.addf %253, %254 : vector<1x1xf32>
    %256 = math.rsqrt %255 : vector<1x1xf32>
    %257 = vector.broadcast %256 : vector<1x1xf32> to vector<9x36xf32>
    %258 = arith.mulf %246, %257 : vector<9x36xf32>
    %259 = tpu.concatenate %216, %237, %258 in 1 : vector<9x36xf32>, vector<9x36xf32>, vector<9x36xf32> -> vector<9x108xf32>
    %260 = vector.broadcast %2 : vector<1x108xf32> to vector<9x108xf32>
    %261 = arith.mulf %259, %260 : vector<9x108xf32>
    %262 = vector.broadcast %3 : vector<1x108xf32> to vector<9x108xf32>
    %263 = arith.addf %261, %262 : vector<9x108xf32>
    %264 = vector.extract_strided_slice %263 {offsets = [0, 0], sizes = [1, 108], strides = [1, 1]} : vector<9x108xf32> to vector<1x108xf32>
    %265 = vector.extract_strided_slice %263 {offsets = [1, 0], sizes = [1, 108], strides = [1, 1]} : vector<9x108xf32> to vector<1x108xf32>
    %266 = vector.extract_strided_slice %263 {offsets = [2, 0], sizes = [1, 108], strides = [1, 1]} : vector<9x108xf32> to vector<1x108xf32>
    %267 = vector.extract_strided_slice %263 {offsets = [3, 0], sizes = [1, 108], strides = [1, 1]} : vector<9x108xf32> to vector<1x108xf32>
    %268 = vector.extract_strided_slice %263 {offsets = [4, 0], sizes = [1, 108], strides = [1, 1]} : vector<9x108xf32> to vector<1x108xf32>
    %269 = vector.extract_strided_slice %263 {offsets = [5, 0], sizes = [1, 108], strides = [1, 1]} : vector<9x108xf32> to vector<1x108xf32>
    %270 = vector.extract_strided_slice %263 {offsets = [6, 0], sizes = [1, 108], strides = [1, 1]} : vector<9x108xf32> to vector<1x108xf32>
    %271 = vector.extract_strided_slice %263 {offsets = [7, 0], sizes = [1, 108], strides = [1, 1]} : vector<9x108xf32> to vector<1x108xf32>
    %272 = vector.extract_strided_slice %263 {offsets = [8, 0], sizes = [1, 108], strides = [1, 1]} : vector<9x108xf32> to vector<1x108xf32>
    %273 = tpu.concatenate %264, %265, %266, %267, %268, %269, %270, %271, %272 in 1 : vector<1x108xf32>, vector<1x108xf32>, vector<1x108xf32>, vector<1x108xf32>, vector<1x108xf32>, vector<1x108xf32>, vector<1x108xf32>, vector<1x108xf32>, vector<1x108xf32> -> vector<1x972xf32>
    %274 = arith.truncf %273 : vector<1x972xf32> to vector<1x972xbf16>
    %c0_121 = arith.constant 0 : index
    %c0_122 = arith.constant 0 : index
    %275 = vector.load %arg8[%c0_121, %c0_122] : memref<972x100xbf16, #tpu.memory_space<vmem>>, vector<972x100xbf16>
    %cst_123 = arith.constant dense<0.000000e+00> : vector<1x100xf32>
    %276 = tpu.matmul %274, %275, %cst_123 {dimension_numbers = #tpu.dot_dimension_numbers<[1], [0], [0], [1], [0, 0, 1, 1], [], []>} : vector<1x972xbf16>, vector<972x100xbf16>, vector<1x100xf32> -> vector<1x100xf32>
    %277 = arith.addf %276, %4 : vector<1x100xf32>
    %cst_124 = arith.constant 0.000000e+00 : f32
    %278 = vector.broadcast %cst_124 : f32 to vector<1x100xf32>
    %279 = arith.maximumf %277, %278 : vector<1x100xf32>
    %280 = arith.truncf %279 : vector<1x100xf32> to vector<1x100xbf16>
    %c0_125 = arith.constant 0 : index
    %c0_126 = arith.constant 0 : index
    %281 = vector.load %arg10[%c0_125, %c0_126] : memref<100x10xbf16, #tpu.memory_space<vmem>>, vector<100x10xbf16>
    %cst_127 = arith.constant dense<0.000000e+00> : vector<1x10xf32>
    %282 = tpu.matmul %280, %281, %cst_127 {dimension_numbers = #tpu.dot_dimension_numbers<[1], [0], [0], [1], [0, 0, 1, 1], [], []>} : vector<1x100xbf16>, vector<100x10xbf16>, vector<1x10xf32> -> vector<1x10xf32>
    %283 = arith.addf %282, %5 : vector<1x10xf32>
    %284 = tpu.concatenate %144, %283 in 0 : vector<1x10xf32>, vector<1x10xf32> -> vector<2x10xf32>
    %c2_i32 = arith.constant 2 : i32
    %285 = arith.muli %arg0, %c2_i32 : i32
    %286 = arith.index_cast %285 : i32 to index
    %c0_128 = arith.constant 0 : index
    %287 = vector.load %arg13[%286, %c0_128] : memref<2x10xf32, #tpu.memory_space<vmem>>, vector<2x10xf32>
    tpu.vector_store %arg13[%286, %c0_128], %284 {strides = array<i32>} : memref<2x10xf32, #tpu.memory_space<vmem>>, vector<2x10xf32>,
    %c0_i32 = arith.constant 0 : i32
    %288 = arith.cmpi eq, %arg0, %c0_i32 : i32
    %289 = arith.extui %288 : i1 to i32
    %c0_i32_129 = arith.constant 0 : i32
    %290 = arith.cmpi ne, %289, %c0_i32_129 : i32
    scf.if %290 {
      %c0_130 = arith.constant 0 : index
      %c0_131 = arith.constant 0 : index
      %291 = vector.load %arg13[%c0_130, %c0_131] : memref<2x10xf32, #tpu.memory_space<vmem>>, vector<2x10xf32>
      %cst_132 = arith.constant dense<0xFF800000> : vector<10xf32>
      %292 = vector.multi_reduction <maximumf>, %291, %cst_132 [0] : vector<2x10xf32> to vector<10xf32>
      %293 = vector.shape_cast %292 : vector<10xf32> to vector<1x10xf32>
      %294 = vector.broadcast %293 : vector<1x10xf32> to vector<2x10xf32>
      %295 = arith.subf %291, %294 : vector<2x10xf32>
      %296 = math.exp %295 : vector<2x10xf32>
      %cst_133 = arith.constant dense<0.000000e+00> : vector<10xf32>
      %297 = vector.multi_reduction <add>, %296, %cst_133 [0] : vector<2x10xf32> to vector<10xf32>
      %298 = vector.shape_cast %297 : vector<10xf32> to vector<1x10xf32>
      %299 = math.log %298 : vector<1x10xf32>
      %300 = arith.addf %299, %293 : vector<1x10xf32>
      %301 = vector.broadcast %300 : vector<1x10xf32> to vector<2x10xf32>
      %302 = arith.subf %291, %301 : vector<2x10xf32>
      %c0_134 = arith.constant 0 : index
      %c0_135 = arith.constant 0 : index
      %303 = vector.load %arg12[%c0_134, %c0_135] : memref<2x10xf32, #tpu.memory_space<vmem>>, vector<2x10xf32>
      tpu.vector_store %arg12[%c0_134, %c0_135], %302 {strides = array<i32>} : memref<2x10xf32, #tpu.memory_space<vmem>>, vector<2x10xf32>,
    } else {
    }
    return
  }
  func.func @transform_0(%arg0: i32) -> (i32, i32, i32) {
    %c0_i32 = arith.constant 0 : i32
    %c0_i32_0 = arith.constant 0 : i32
    %c0_i32_1 = arith.constant 0 : i32
    return %arg0, %c0_i32, %c0_i32_0 : i32, i32, i32
  }
  func.func @transform_1(%arg0: i32) -> (i32, i32, i32) {
    %c0_i32 = arith.constant 0 : i32
    %c0_i32_0 = arith.constant 0 : i32
    %c0_i32_1 = arith.constant 0 : i32
    %c0_i32_2 = arith.constant 0 : i32
    return %c0_i32, %c0_i32_0, %c0_i32_1 : i32, i32, i32
  }
  func.func @transform_2(%arg0: i32) -> (i32, i32) {
    %c0_i32 = arith.constant 0 : i32
    %c0_i32_0 = arith.constant 0 : i32
    %c0_i32_1 = arith.constant 0 : i32
    return %c0_i32, %c0_i32_0 : i32, i32
  }
  func.func @transform_3(%arg0: i32) -> (i32, i32, i32) {
    %c0_i32 = arith.constant 0 : i32
    %c0_i32_0 = arith.constant 0 : i32
    %c0_i32_1 = arith.constant 0 : i32
    %c0_i32_2 = arith.constant 0 : i32
    return %c0_i32, %c0_i32_0, %c0_i32_1 : i32, i32, i32
  }
  func.func @transform_4(%arg0: i32) -> (i32, i32) {
    %c0_i32 = arith.constant 0 : i32
    %c0_i32_0 = arith.constant 0 : i32
    %c0_i32_1 = arith.constant 0 : i32
    return %c0_i32, %c0_i32_0 : i32, i32
  }
  func.func @transform_5(%arg0: i32) -> (i32, i32) {
    %c0_i32 = arith.constant 0 : i32
    %c0_i32_0 = arith.constant 0 : i32
    %c0_i32_1 = arith.constant 0 : i32
    return %c0_i32, %c0_i32_0 : i32, i32
  }
  func.func @transform_6(%arg0: i32) -> (i32, i32) {
    %c0_i32 = arith.constant 0 : i32
    %c0_i32_0 = arith.constant 0 : i32
    %c0_i32_1 = arith.constant 0 : i32
    return %c0_i32, %c0_i32_0 : i32, i32
  }
  func.func @transform_7(%arg0: i32) -> (i32, i32) {
    %c0_i32 = arith.constant 0 : i32
    %c0_i32_0 = arith.constant 0 : i32
    %c0_i32_1 = arith.constant 0 : i32
    return %c0_i32, %c0_i32_0 : i32, i32
  }
  func.func @transform_8(%arg0: i32) -> (i32, i32) {
    %c0_i32 = arith.constant 0 : i32
    %c0_i32_0 = arith.constant 0 : i32
    %c0_i32_1 = arith.constant 0 : i32
    return %c0_i32, %c0_i32_0 : i32, i32
  }
  func.func @transform_9(%arg0: i32) -> (i32, i32) {
    %c0_i32 = arith.constant 0 : i32
    %c0_i32_0 = arith.constant 0 : i32
    %c0_i32_1 = arith.constant 0 : i32
    return %c0_i32, %c0_i32_0 : i32, i32
  }
  func.func @transform_10(%arg0: i32) -> (i32, i32) {
    %c0_i32 = arith.constant 0 : i32
    %c0_i32_0 = arith.constant 0 : i32
    %c0_i32_1 = arith.constant 0 : i32
    return %c0_i32, %c0_i32_0 : i32, i32
  }
  func.func @transform_11(%arg0: i32) -> (i32, i32) {
    %c0_i32 = arith.constant 0 : i32
    %c0_i32_0 = arith.constant 0 : i32
    %c0_i32_1 = arith.constant 0 : i32
    return %c0_i32, %c0_i32_0 : i32, i32
  }
}

</mosaic_0001>

<bundles_post_ra>
// kernel: classification_forward.1
= control target key start
LH: loop header
LB: loop body
LE: loop exit
PB: predicated region body
PF: predicated region fallthrough
CT: control target
= control target key end

     0   :  { %v5068_v1 = vmov 0.0   ;;  %vm3731_vm0 = vmmov 0   ;;  %v5070_v8 = vmov 0   ;;  %vm149_vm1 = vcmask 1043456   ;;  %s5056_s0 = inlined_call_operand.vmem [shape: bf16[2,14,56], index: 0, kind: input, shape index: {}]   ;;  %s5057_s1 = inlined_call_operand.vmem [shape: bf16[2,56,260], index: 1, kind: input, shape index: {}]   ;;  %s5058_s2 = inlined_call_operand.vmem [shape: f32[1,65], index: 2, kind: input, shape index: {}]   ;;  %s5059_s3 = inlined_call_operand.vmem [shape: bf16[5,65,108], index: 3, kind: input, shape index: {}]   ;;  %s5060_s4 = inlined_call_operand.vmem [shape: f32[1,108], index: 4, kind: input, shape index: {}]   ;;  %s5061_s5 = inlined_call_operand.vmem [shape: f32[1,108], index: 5, kind: input, shape index: {}]   ;;  %s5062_s6 = inlined_call_operand.vmem [shape: f32[1,108], index: 6, kind: input, shape index: {}]   ;;  %s5063_s7 = inlined_call_operand.vmem [shape: bf16[972,100], index: 7, kind: input, shape index: {}]   ;;  %s5064_s8 = inlined_call_operand.vmem [shape: f32[1,100], index: 8, kind: input, shape index: {}]   ;;  %s5065_s9 = inlined_call_operand.vmem [shape: bf16[100,10], index: 9, kind: input, shape index: {}]   ;;  %s5066_s10 = inlined_call_operand.vmem [shape: f32[1,10], index: 10, kind: input, shape index: {}]   ;;  %s5067_s11 = inlined_call_operand.hbm [shape: f32[2,10], index: 11, kind: output, shape index: {}]  }
   0x1   :  { %v3496_v0 = vld [vmem:[%s5057_s1 + $0x58] ss:$12 sps:$4 sm:$0xff]   ;;  %3240 = vmatprep.subr.bf16.mxu1 %v5068_v1  ;;  %v3498_v2 = vld [vmem:[%s5057_s1 + $0x5c] ss:$12 sps:$4 sm:$0xff]   ;;  %v3499_v3 = vld [vmem:[%s5057_s1 + $0x54] ss:$12 sps:$4 sm:$0xff]   ;;  %3248 = vmatprep.mubr.msk.bf16.mxu1 %vm3731_vm0, %v5068_v1 }
   0x2   :  { %159 = vmatprep.subr.bf16.mxu0 %v3496_v0  ;;  %3241 = vmatpush3.bf16.msra.mxu1 %v3498_v2  ;;  %v3500_v4 = vld [vmem:[%s5057_s1 + $0x70] ss:$12 sps:$4 sm:$0xff]   ;;  %v3502_v5 = vld [vmem:[%s5057_s1 + $0x74] ss:$12 sps:$4 sm:$0xff]   ;;  %v3503_v6 = vld [vmem:[%s5057_s1 + $0x6c] ss:$12 sps:$4 sm:$0xff]  }
   0x3   :  { %160 = vmatpush1.bf16.msra.mxu0 %v3499_v3  ;;  %3242 = vmatprep.subr.bf16.mxu1 %v5068_v1  ;;  %v3504_v7 = vld [vmem:[%s5057_s1 + $0x88] ss:$12 sps:$4 sm:$0xff]   ;;  %v3506_v9 = vld [vmem:[%s5057_s1 + $0x8c] ss:$12 sps:$4 sm:$0xff]   ;;  %v3507_v10 = vld [vmem:[%s5057_s1 + $0x84] ss:$12 sps:$4 sm:$0xff]  }
   0x4   :  { %161 = vmatprep.subr.bf16.mxu0 %v3500_v4  ;;  %191 = vmatprep.mubr.bf16.mxu0 %v5070_v8  ;;  %v2823_v11 = vld [vmem:[%s5057_s1 + $0x9c] sm:$0xff]  ;;  %v3509_v12 = vld [vmem:[%s5057_s1 + $0xa4] ss:$0 sps:$4 sm:$0xff]   ;;  %vm145_vm2 = vcmask 457728   ;;  %v3515_v24 = vld [vmem:[%s5057_s1 + $0x8] ss:$12 sps:$4 sm:$0xff]  }
   0x5   :  { %v2835_v13 = vcombine.low %v2823_v11, %v2823_v11  ;;  %v3511_v14 = vld [vmem:[%s5056_s0] sm:$0x7f]   ;;  %v3848_v15 = vcombine.high %v2823_v11, %v2823_v11  ;;  %v3852_v18 = vsel %vm149_vm1, %v3509_v12, 0  ;;  %v3518_v25 = vld [vmem:[%s5057_s1 + $0x1c] ss:$12 sps:$4 sm:$0xff]  }
   0x6   :  { %3243 = vmatpush3.bf16.msra.mxu1 %v3502_v5  ;;  %v83_v16 = vshrl.u32 %v3511_v14, 16  ;;  %v85_v17 = vshll.u32 %v3511_v14, 16  ;;  %v3514_v21 = vld [vmem:[%s5057_s1 + $0x4] ss:$12 sps:$4 sm:$0xff]   ;;  %v3512_v23 = vld [vmem:[%s5057_s1] ss:$12 sps:$4 sm:$0xff]  }
   0x7   :  { %162 = vmatpush1.bf16.msra.mxu0 %v3503_v6  ;;  %3244 = vmatprep.subr.bf16.mxu1 %v5068_v1  ;;  %v3855_v19 = vsel %vm149_vm1, %v2835_v13, 0  ;;  %v60_v26 = vld [vmem:[%s5057_s1 + $0x48] sm:$0xff]  ;;  %v3525_v28 = vld [vmem:[%s5057_s1 + $0x50] ss:$0 sps:$4 sm:$0xff]   ;;  %v3516_v30 = vld [vmem:[%s5057_s1 + $0x18] ss:$12 sps:$4 sm:$0xff]  }
   0x8   :  { %163 = vmatprep.subr.bf16.mxu0 %v3504_v7  ;;  %v87_v20 = vrot.slane %v85_v17, 1  ;;  %v3519_v27 = vld [vmem:[%s5057_s1 + $0x20] ss:$12 sps:$4 sm:$0xff]   ;;  %v2850_v29 = vcombine.low %v60_v26, %v60_v26  ;;  %v3892_v32 = vsel %vm149_vm1, %v3525_v28, 0  ;;  %v3523_v34 = vld [vmem:[%s5057_s1 + $0x38] ss:$12 sps:$4 sm:$0xff]   ;;  %v3908_v36 = vcombine.high %v60_v26, %v60_v26 }
   0x9   :  { %v3522_v31 = vld [vmem:[%s5057_s1 + $0x34] ss:$12 sps:$4 sm:$0xff]   ;;  %v3520_v35 = vld [vmem:[%s5057_s1 + $0x30] ss:$12 sps:$4 sm:$0xff]  }
   0xa   :  { %3245 = vmatpush3.bf16.msra.mxu1 %v3506_v9  ;;  %v88_v22 = vor.u32 %v87_v20, %v83_v16  ;;  %v3895_v33 = vsel %vm149_vm1, %v2850_v29, 0 }
   0xb   :  { %164 = vmatpush1.bf16.msra.mxu0 %v3507_v10  ;;  %3246 = vmatprep.subr.bf16.mxu1 %v5068_v1 }
   0xc   :  { %2838 = vmatprep.subr.msk.bf16.mxu0 %vm149_vm1, %v3848_v15 }
   0xe   :  { %3247 = vmatpush3.bf16.msra.mxu1 %v3852_v18 }
   0xf   :  { %166 = vmatpush1.bf16.msra.mxu0 %v3855_v19  ;;  %3252 = vmatprep.subr.bf16.mxu1 %v5068_v1 }
  0x10   :  { %310 = vmatprep.subr.bf16.mxu0 %v3514_v21 }
  0x11   :  { %3249 = vmatmul.mubr.msk.bf16.vlgmr.msra.gmra.mrb[0].mxu1 %vm145_vm2, %v88_v22 }
  0x12   :  { %3253 = vmatpush3.bf16.msra.mxu1 %v3515_v24  ;;  %2839 = vmatmul.mubr.msk.bf16.vlgmr.msra.gmra.mrb[0].mxu0 %vm145_vm2, %v88_v22 }
  0x13   :  { %311 = vmatpush1.bf16.msra.mxu0 %v3512_v23  ;;  %3254 = vmatprep.subr.bf16.mxu1 %v5068_v1 }
  0x14   :  { %312 = vmatprep.subr.bf16.mxu0 %v3518_v25  ;;  %3260 = vmatprep.mubr.msk.bf16.mxu1 %vm3731_vm0, %v5068_v1 }
  0x15   :  { %342 = vmatprep.mubr.bf16.mxu0 %v5070_v8 }
  0x16   :  { %3255 = vmatpush3.bf16.msra.mxu1 %v3519_v27 }
  0x17   :  { %313 = vmatpush1.bf16.msra.mxu0 %v3516_v30  ;;  %3256 = vmatprep.subr.bf16.mxu1 %v5068_v1 }
  0x18   :  { %314 = vmatprep.subr.bf16.mxu0 %v3522_v31 }
  0x1a   :  { %3257 = vmatpush3.bf16.msra.mxu1 %v3523_v34 }
  0x1b   :  { %315 = vmatpush1.bf16.msra.mxu0 %v3520_v35  ;;  %3258 = vmatprep.subr.bf16.mxu1 %v5068_v1 }
  0x1c   :  { %2853 = vmatprep.subr.msk.bf16.mxu0 %vm149_vm1, %v3908_v36 }
  0x1e   :  { %3259 = vmatpush3.bf16.msra.mxu1 %v3892_v32 }
  0x1f   :  { %317 = vmatpush1.bf16.msra.mxu0 %v3895_v33  ;;  %3278 = vmatprep.subr.bf16.mxu1 %v5068_v1 }
  0x20   :  { %3264 = vmatprep.subr.bf16.mxu0 %v5068_v1 }
  0x21   :  { %3261 = vmatmul.mubr.msk.bf16.vlgmr.msra.gmra.mrb[0].mxu1 %vm145_vm2, %v3511_v14 }
  0x22   :  { %2854 = vmatmul.mubr.msk.bf16.vlgmr.msra.gmra.mrb[0].mxu0 %vm145_vm2, %v3511_v14  ;;  %3288 = vmatprep.mubr.msk.bf16.mxu1 %vm3731_vm0, %v5068_v1 }
  0x23   :  { %3274 = vmatprep.mubr.msk.bf16.mxu0 %vm3731_vm0, %v5068_v1 }
  0x24   :  { %16 = vsyncpa [#allocation4], 0  ;;  %v3527_v37 = vld [vmem:[%s5059_s3] sm:$0xff]   ;;  %v3528_v40 = vld [vmem:[%s5059_s3 + $0x8] sm:$0xff]   ;;  %s3733_s12 = smov 63   ;;  %vm503_vm3 = vcmask 1040384  }
  0x25   :  { %v3529_v38 = vld [vmem:[%s5059_s3 + $0x24] sm:$0xff]   ;;  %3279 = vmatpush3.bf16.msra.mxu1 %v3527_v37  ;;  %v3530_v48 = vld [vmem:[%s5059_s3 + $0x10] sm:$0xff]   ;;  %v3532_v50 = vld [vmem:[%s5059_s3 + $0x18] sm:$0xff]   ;;  %v3961_v53 = vsel %vm503_vm3, 65535, %v5070_v8  ;;  %vm406_vm4 = vcmask 515072   ;;  %s3734_s27 = smov 126  }
  0x26   :  { %3265 = vmatpush3.bf16.msra.mxu0 %v3529_v38  ;;  %3280 = vmatprep.subr.bf16.mxu1 %v5068_v1  ;;  %v3531_v49 = vld [vmem:[%s5059_s3 + $0x2c] sm:$0xff]   ;;  %v3533_v51 = vld [vmem:[%s5059_s3 + $0x34] sm:$0xff]   ;;  %v3534_v52 = vld [vmem:[%s5059_s3 + $0x20] ss:$0 sps:$4 sm:$0x11]   ;;  %vm499_vm5 = vcmask 531456  }
  0x27   :  { %3266 = vmatprep.subr.bf16.mxu0 %v5068_v1  ;;  %v3964_v54 = vand.u32 %v3534_v52, %v3961_v53  ;;  %v3535_v56 = vld [vmem:[%s5059_s3 + $0x3c] sm:$0xff]   ;;  %v3537_v61 = vld [vmem:[%s5059_s3 + $0x44] ss:$0 sps:$4 sm:$0x11]   ;;  %v3536_v22 = vld [vmem:[%s5059_s3 + $0x6c] sm:$0xff]   ;;  %s3735_s28 = smov 92  }
  0x28   :  { %v3979_v63 = vand.u32 %v3537_v61, %v3961_v53  ;;  %v2856_v12 = vld [vmem:[%s5058_s2] ss:$0 sm:$0xff]  ;;  %v3538_v25 = vld [vmem:[%s5059_s3 + $0x74] sm:$0xff]   ;;  %v3539_v28 = vld [vmem:[%s5059_s3 + $0x48] sm:$0xff]   ;;  %s3736_s29 = smov 56   ;;  %vm897_vm6 = vcmask 293888  }
  0x29   :  { %3281 = vmatpush3.bf16.msra.mxu1 %v3528_v40  ;;  %v3540_v30 = vld [vmem:[%s5059_s3 + $0x7c] sm:$0xff]   ;;  %v3541_v31 = vld [vmem:[%s5059_s3 + $0x50] sm:$0xff]   ;;  %v3542_v34 = vld [vmem:[%s5059_s3 + $0x84] sm:$0xff]   ;;  %vm901_vm7 = vcmask 286720   ;;  %vm1045_vm8 = vcmask 588800   ;;  %s3737_s22 = smov 48  }
  0x2a   :  { %3282 = vmatprep.subr.bf16.mxu1 %v5068_v1  ;;  %3267 = vmatpush3.bf16.msra.mxu0 %v3531_v49  ;;  %v3544_v35 = vld [vmem:[%s5059_s3 + $0x8c] ss:$0 sps:$4 sm:$0x11]   ;;  %v3543_v37 = vld [vmem:[%s5059_s3 + $0x58] sm:$0xff]   ;;  %s3738_s23 = smov 68   ;;  %s3739_s24 = smov 28  }
  0x2b   :  { %3268 = vmatprep.subr.bf16.mxu0 %v5068_v1  ;;  %v4031_v38 = vand.u32 %v3544_v35, %v3961_v53  ;;  %v3550_v49 = vld [vmem:[%s5059_s3 + $0xa8] sm:$0xff]   ;;  %s3740_s25 = smov 88   ;;  %s3741_s26 = smov 116   ;;  %vm1103_vm9 = vcmask 392192   ;;  %vm1101_vm10 = vcmask 556032   ;;  %vm1097_vm11 = vcmask 883712  }
  0x2c   :  { %s3742_s30 = smov 108   ;;  %s3743_s13 = smov 8   ;;  %vm1099_vm12 = vcmask 719872   ;;  %vm1107_vm13 = vcmask 64512   ;;  %vm5076_vm14 = vcmask 949248   ;;  %vm5074_vm15 = vcmask 621568  }
  0x2d   :  { %3283 = vmatpush3.bf16.msra.mxu1 %v3530_v48  ;;  %v3549_v48 = vld [vmem:[%s5059_s3 + $0xa0] sm:$0xff]   ;;  %s5073_s14 = smov 96  }
  0x2e   :  { %3284 = vmatprep.subr.bf16.mxu1 %v5068_v1  ;;  %3269 = vmatpush3.bf16.msra.mxu0 %v3533_v51 }
  0x2f   :  { %3270 = vmatprep.subr.bf16.mxu0 %v5068_v1 }
  0x31   :  { %3285 = vmatpush3.bf16.msra.mxu1 %v3532_v50  ;;  %v3551_v50 = vld [vmem:[%s5059_s3 + $0xb0] ss:$0 sps:$4 sm:$0x11]  }
  0x32   :  { %3286 = vmatprep.subr.bf16.mxu1 %v5068_v1  ;;  %3271 = vmatpush3.bf16.msra.mxu0 %v3535_v56  ;;  %v4072_v51 = vand.u32 %v3551_v50, %v3961_v53 }
  0x33   :  { %3272 = vmatprep.subr.bf16.mxu0 %v5068_v1 }
  0x35   :  { %3287 = vmatpush3.bf16.msra.mxu1 %v3964_v54 }
  0x36   :  { %3306 = vmatprep.subr.bf16.mxu1 %v5068_v1  ;;  %3273 = vmatpush3.bf16.msra.mxu0 %v3979_v63 }
  0x37   :  { %3292 = vmatprep.subr.bf16.mxu0 %v5068_v1 }
  0xf4   :  { %v387_v39 = vpop.f32.mrb[0].mxu1 }
  0xf5   :  { %415 = vrot.lane.b32.xlu1 %v387_v39, %s3733_s12  ;;  %v344_v41 = vpop.f32.mrb[0].mxu0  ;;  %v3262_v42 = vpop.f32.mrb[1].mxu1 }
  0xf6   :  { %v346_v43 = vpop.f32.mrb[1].mxu0  ;;  %v390_v44 = vpop.f32.mrb[2].mxu1  ;;  %v3546_v42 = vld [vmem:[%s5059_s3 + $0x68] ss:$0 sps:$4 sm:$0x11]  }
  0xf7   :  { %v3263_v45 = vpop.f32.mrb[3].mxu1  ;;  %400 = vrot.lane.b32.xlu0 %v346_v43, %s3733_s12  ;;  %v348_v46 = vpop.f32.mrb[2].mxu0 }
  0xf8   :  { %v350_v47 = vpop.f32.mrb[3].mxu0  ;;  %v3547_v45 = vld [vmem:[%s5059_s3 + $0x90] sm:$0xff]  }
  0xf9   :  { %417 = vrot.lane.b32.xlu1 %v390_v44, %s3733_s12  ;;  %v4043_v44 = vand.u32 %v3546_v42, %v3961_v53 }
  0xfb   :  { %404 = vrot.lane.b32.xlu0 %v350_v47, %s3733_s12 }
  0xfd   :  { %402 = vrot.lane.b32.xlu1 %v348_v46, %s3733_s12 }
  0xff   :  { %398 = vrot.lane.b32.xlu0 %v344_v41, %s3733_s12 }
 0x167   :  { %v416_v55 = vpop.permute.xlu1 %415 }
 0x169   :  { %v401_v57 = vpop.permute.xlu0 %400 }
 0x16a   :  { %v419_v58 = vsel %vm406_vm4, %v401_v57, %v416_v55 }
 0x16b   :  { %v423_v59 = vmax.f32 %v346_v43, %v419_v58  ;;  %v418_v60 = vpop.permute.xlu1 %417 }
 0x16d   :  { %427 = vrot.lane.b32.xlu0 %v423_v59, %s3734_s27  ;;  %v405_v62 = vpop.permute.xlu0 %404 }
 0x16e   :  { %v420_v0 = vsel %vm406_vm4, %v405_v62, %v418_v60 }
 0x16f   :  { %v424_v2 = vmax.f32 %v350_v47, %v420_v0  ;;  %v403_v3 = vpop.permute.xlu1 %402  ;;  %v3548_v47 = vld [vmem:[%s5059_s3 + $0x98] sm:$0xff]  }
 0x170   :  { %v408_v4 = vsel %vm406_vm4, %v403_v3, %v405_v62 }
 0x171   :  { %429 = vrot.lane.b32.xlu1 %v424_v2, %s3734_s27  ;;  %v399_v5 = vpop.permute.xlu0 %398  ;;  %v412_v6 = vmax.f32 %v348_v46, %v408_v4 }
 0x172   :  { %v407_v7 = vsel %vm406_vm4, %v399_v5, %v401_v57 }
 0x173   :  { %v411_v9 = vmax.f32 %v344_v41, %v407_v7  ;;  %v3545_v41 = vld [vmem:[%s5059_s3 + $0x60] sm:$0xff]  }
 0x1df   :  { %v428_v10 = vpop.permute.xlu0 %427 }
 0x1e0   :  { %v433_v11 = vmax.f32 %v411_v9, %v428_v10 }
 0x1e2   :  { %v441_v14 = vadd.f32 %v2856_v12, %v433_v11 }
 0x1e3   :  { %v430_v13 = vpop.permute.xlu1 %429 }
 0x1e4   :  { %v434_v16 = vmax.f32 %v412_v6, %v430_v13  ;;  %v443_v20 = vmax.f32 %v441_v14, 0.0 }
 0x1e6   :  { %v442_v17 = vadd.f32 %v2856_v12, %v434_v16  ;;  %v2923_v16 = vld [vmem:[%s5060_s4] ss:$0 sm:$0xff] }
 0x1e8   :  { %v444_v21 = vmax.f32 %v442_v17, 0.0 }
 0x1ea   :  { %v3993_v23 = vpack.c.bf16 %v444_v21, %v443_v20 }
 0x1ec   :  { %3289 = vmatmul.mubr.msk.bf16.vlgmr.msra.gmra.mrb[4].mxu1 %vm499_vm5, %v3993_v23  ;;  %v468_v24 = vshll.u32 %v3993_v23, 16  ;;  %v466_v26 = vshrl.u32 %v3993_v23, 16  ;;  %v634_v46 = vrot.slane %v3993_v23, 1  ;;  %v810_v52 = vrot.slane %v3993_v23, 2 }
 0x1ed   :  { %3307 = vmatpush3.bf16.msra.mxu1 %v3536_v22  ;;  %3316 = vmatprep.mubr.msk.bf16.mxu1 %vm3731_vm0, %v5068_v1 }
 0x1ee   :  { %3308 = vmatprep.subr.bf16.mxu1 %v5068_v1  ;;  %v470_v27 = vrot.slane %v468_v24, 1  ;;  %v721_v39 = vrot.slane %v466_v26, 1  ;;  %v722_v40 = vrot.slane %v468_v24, 2 }
 0x1f0   :  { %v471_v29 = vor.u32 %v470_v27, %v466_v26  ;;  %v723_v43 = vor.u32 %v722_v40, %v721_v39 }
 0x1f1   :  { %3309 = vmatpush3.bf16.msra.mxu1 %v3538_v25 }
 0x1f2   :  { %3275 = vmatmul.mubr.msk.bf16.vlgmr.msra.gmra.mrb[4].mxu0 %vm499_vm5, %v471_v29  ;;  %3310 = vmatprep.subr.bf16.mxu1 %v5068_v1 }
 0x1f3   :  { %3293 = vmatpush3.bf16.msra.mxu0 %v3539_v28  ;;  %3302 = vmatprep.mubr.msk.bf16.mxu0 %vm3731_vm0, %v5068_v1 }
 0x1f4   :  { %3294 = vmatprep.subr.bf16.mxu0 %v5068_v1 }
 0x1f5   :  { %3311 = vmatpush3.bf16.msra.mxu1 %v3540_v30 }
 0x1f6   :  { %3312 = vmatprep.subr.bf16.mxu1 %v5068_v1 }
 0x1f7   :  { %3295 = vmatpush3.bf16.msra.mxu0 %v3541_v31 }
 0x1f8   :  { %3296 = vmatprep.subr.bf16.mxu0 %v5068_v1 }
 0x1f9   :  { %3313 = vmatpush3.bf16.msra.mxu1 %v3542_v34 }
 0x1fa   :  { %3314 = vmatprep.subr.bf16.mxu1 %v5068_v1 }
 0x1fb   :  { %3297 = vmatpush3.bf16.msra.mxu0 %v3543_v37 }
 0x1fc   :  { %3298 = vmatprep.subr.bf16.mxu0 %v5068_v1 }
 0x1fd   :  { %3315 = vmatpush3.bf16.msra.mxu1 %v4031_v38 }
 0x1ff   :  { %3299 = vmatpush3.bf16.msra.mxu0 %v3545_v41 }
 0x200   :  { %3317 = vmatmul.mubr.msk.bf16.vlgmr.msra.gmra.mrb[8].mxu1 %vm499_vm5, %v723_v43  ;;  %3300 = vmatprep.subr.bf16.mxu0 %v5068_v1 }
 0x203   :  { %3301 = vmatpush3.bf16.msra.mxu0 %v4043_v44 }
 0x204   :  { %3320 = vmatprep.subr.bf16.mxu0 %v5068_v1 }
 0x206   :  { %3303 = vmatmul.mubr.msk.bf16.vlgmr.msra.gmra.mrb[8].mxu0 %vm499_vm5, %v634_v46 }
 0x207   :  { %3321 = vmatpush3.bf16.msra.mxu0 %v3547_v45  ;;  %3330 = vmatprep.mubr.msk.bf16.mxu0 %vm3731_vm0, %v5068_v1 }
 0x208   :  { %3322 = vmatprep.subr.bf16.mxu0 %v5068_v1 }
 0x20b   :  { %3323 = vmatpush3.bf16.msra.mxu0 %v3548_v47 }
 0x20c   :  { %3324 = vmatprep.subr.bf16.mxu0 %v5068_v1 }
 0x20f   :  { %3325 = vmatpush3.bf16.msra.mxu0 %v3549_v48 }
 0x210   :  { %3326 = vmatprep.subr.bf16.mxu0 %v5068_v1 }
 0x213   :  { %3327 = vmatpush3.bf16.msra.mxu0 %v3550_v49 }
 0x214   :  { %3328 = vmatprep.subr.bf16.mxu0 %v5068_v1 }
 0x217   :  { %3329 = vmatpush3.bf16.msra.mxu0 %v4072_v51 }
 0x21a   :  { %3331 = vmatmul.mubr.msk.bf16.vlgmr.msra.gmra.mrb[12].mxu0 %vm499_vm5, %v810_v52 }
 0x2bf   :  { %v616_v55 = vpop.f32.mrb[4].mxu1 }
 0x2c0   :  { %v3290_v56 = vpop.f32.mrb[5].mxu1 }
 0x2c1   :  { %v619_v57 = vpop.f32.mrb[6].mxu1 }
 0x2c2   :  { %v3291_v58 = vpop.f32.mrb[7].mxu1 }
 0x2c5   :  { %v543_v59 = vpop.f32.mrb[4].mxu0 }
 0x2c6   :  { %v617_v60 = vadd.f32 %v616_v55, %v543_v59  ;;  %v3276_v61 = vpop.f32.mrb[5].mxu0 }
 0x2c7   :  { %v546_v62 = vpop.f32.mrb[6].mxu0 }
 0x2c8   :  { %v620_v0 = vadd.f32 %v619_v57, %v546_v62  ;;  %v3277_v2 = vpop.f32.mrb[7].mxu0 }
 0x2d3   :  { %v791_v53 = vpop.f32.mrb[8].mxu1 }
 0x2d4   :  { %v3318_v3 = vpop.f32.mrb[9].mxu1 }
 0x2d5   :  { %v794_v4 = vpop.f32.mrb[10].mxu1 }
 0x2d6   :  { %v3319_v5 = vpop.f32.mrb[11].mxu1 }
 0x2d9   :  { %v702_v6 = vpop.f32.mrb[8].mxu0 }
 0x2da   :  { %v709_v7 = vadd.f32 %v702_v6, %v617_v60  ;;  %v3304_v9 = vpop.f32.mrb[9].mxu0 }
 0x2db   :  { %v705_v10 = vpop.f32.mrb[10].mxu0 }
 0x2dc   :  { %v710_v11 = vadd.f32 %v705_v10, %v620_v0  ;;  %v3305_v12 = vpop.f32.mrb[11].mxu0  ;;  %v798_v13 = vadd.f32 %v791_v53, %v709_v7 }
 0x2de   :  { %v799_v14 = vadd.f32 %v794_v4, %v710_v11 }
 0x2ed   :  { %v878_v17 = vpop.f32.mrb[12].mxu0 }
 0x2ee   :  { %v885_v20 = vadd.f32 %v878_v17, %v798_v13  ;;  %v3332_v21 = vpop.f32.mrb[13].mxu0 }
 0x2ef   :  { %v881_v22 = vpop.f32.mrb[14].mxu0 }
 0x2f0   :  { %v893_v23 = vadd.f32 %v2923_v16, %v885_v20  ;;  %v886_v24 = vadd.f32 %v881_v22, %v799_v14  ;;  %v3333_v25 = vpop.f32.mrb[15].mxu0 }
 0x2f2   :  { %v4081_v26 = vmax.f32 %v893_v23, 0.0  ;;  %v894_v27 = vadd.f32 %v2923_v16, %v886_v24 }
 0x2f4   :  { %v4083_v28 = vmax.f32 %v894_v27, 0.0  ;;  %939 = vrot.lane.b32.xlu1 %v4081_v26, %s3735_s28  ;;  %v898_v42 = vsel %vm897_vm6, %v4081_v26, 0.0 }
 0x2f6   :  { %941 = vrot.lane.b32.xlu0 %v4083_v28, %s3735_s28  ;;  %v902_v35 = vsel %vm901_vm7, %v4083_v28, 0.0 }
 0x2f8   :  { %991 = vrot.lane.b32.xlu1 %v4081_v26, %s3736_s29 }
 0x2fa   :  { %993 = vrot.lane.b32.xlu0 %v4083_v28, %s3736_s29 }
 0x366   :  { %v940_v29 = vpop.permute.xlu1 %939 }
 0x367   :  { %v945_v30 = vsel %vm897_vm6, %v940_v29, 0.0 }
 0x368   :  { %946 = vadd.xlane.f32.xlu1 %v945_v30  ;;  %v942_v31 = vpop.permute.xlu0 %941 }
 0x369   :  { %v948_v34 = vsel %vm901_vm7, %v942_v31, 0.0 }
 0x36a   :  { %949 = vadd.xlane.f32.xlu0 %v948_v34  ;;  %v992_v40 = vpop.permute.xlu1 %991 }
 0x36b   :  { %v997_v41 = vsel %vm897_vm6, %v992_v40, 0.0 }
 0x36c   :  { %v994_v37 = vpop.permute.xlu0 %993  ;;  %903 = vadd.xlane.f32.xlu1 %v902_v35 }
 0x36d   :  { %v1000_v39 = vsel %vm901_vm7, %v994_v37, 0.0 }
 0x36e   :  { %1001 = vadd.xlane.f32.xlu0 %v1000_v39 }
 0x372   :  { %998 = vadd.xlane.f32.xlu0 %v997_v41 }
 0x376   :  { %899 = vadd.xlane.f32.xlu0 %v898_v42 }
 0x3f5   :  { %v947_v45 = vpop.xlane.xlu1 %946 }
 0x3f7   :  { %v950_v43 = vpop.xlane.xlu0 %949 }
 0x3f8   :  { %v951_v46 = vsel %vm503_vm3, %v950_v43, 0.0 }
 0x3f9   :  { %v952_v47 = vadd.f32 %v951_v46, %v947_v45  ;;  %v904_v57 = vpop.xlane.xlu1 %903 }
 0x3fa   :  { %v905_v62 = vsel %vm503_vm3, %v904_v57, 0.0  ;;  %v4180_v57 = vld [vmem:[%s5063_s7 + $0x88] sm:$0xff]  }
 0x3fb   :  { %v953_v48 = vrot.slane %v952_v47, 4  ;;  %v1002_v49 = vpop.xlane.xlu0 %1001 }
 0x3fc   :  { %v1003_v55 = vsel %vm503_vm3, %v1002_v49, 0.0  ;;  %v4152_v49 = vld [vmem:[%s5063_s7 + $0x80] sm:$0xff]  }
 0x3fd   :  { %v954_v50 = vadd.f32 %v953_v48, %v952_v47  ;;  %v4147_v48 = vld [vmem:[%s5063_s7 + $0xc0] sm:$0xff]  }
 0x3fe   :  { %3074 = vmatprep.subr.bf16.mxu0 %v4147_v48 }
 0x3ff   :  { %v955_v52 = vrot.slane %v954_v50, 2  ;;  %v999_v56 = vpop.xlane.xlu0 %998  ;;  %3075 = vmatpush3.bf16.msra.mxu0 %v4152_v49 }
 0x400   :  { %v1004_v58 = vadd.f32 %v1003_v55, %v999_v56  ;;  %v4167_v55 = vld [vmem:[%s5063_s7] sm:$0xff]   ;;  %v4173_v56 = vld [vmem:[%s5063_s7 + $0x48] sm:$0xff]  }
 0x401   :  { %v956_v59 = vadd.f32 %v955_v52, %v954_v50  ;;  %v4157_v50 = vld [vmem:[%s5063_s7 + $0xc8] sm:$0xff]   ;;  %v4162_v52 = vld [vmem:[%s5063_s7 + $0x40] sm:$0xff]  }
 0x402   :  { %v1005_v60 = vrot.slane %v1004_v58, 4  ;;  %3052 = vmatprep.subr.bf16.mxu1 %v4162_v52  ;;  %3076 = vmatprep.subr.bf16.mxu0 %v4157_v50 }
 0x403   :  { %v957_v61 = vrot.slane %v956_v59, 1  ;;  %v900_v0 = vpop.xlane.xlu0 %899  ;;  %3053 = vmatpush3.bf16.msra.mxu1 %v4167_v55  ;;  %3077 = vmatpush3.bf16.msra.mxu0 %v4180_v57 }
 0x404   :  { %v1006_v2 = vadd.f32 %v1005_v60, %v1004_v58  ;;  %v906_v53 = vadd.f32 %v905_v62, %v900_v0  ;;  %v4187_v58 = vld [vmem:[%s5063_s7 + $0xd0] sm:$0xff]   ;;  %3054 = vmatprep.subr.bf16.mxu1 %v4173_v56  ;;  %v4211_v62 = vld [vmem:[%s5063_s7 + $0xd8] sm:$0xff]  }
 0x405   :  { %v958_v3 = vadd.f32 %v957_v61, %v956_v59  ;;  %v4192_v59 = vld [vmem:[%s5063_s7 + $0x8] sm:$0xff]   ;;  %v4198_v60 = vld [vmem:[%s5063_s7 + $0x50] sm:$0xff]   ;;  %3078 = vmatprep.subr.bf16.mxu0 %v4187_v58 }
 0x406   :  { %v1007_v4 = vrot.slane %v1006_v2, 2  ;;  %v907_v5 = vrot.slane %v906_v53, 4  ;;  %v4204_v61 = vld [vmem:[%s5063_s7 + $0x90] sm:$0xff]  }
 0x407   :  { %v959_v6 = vmul.f32 0.0030864198, %v958_v3  ;;  %3055 = vmatpush3.bf16.msra.mxu1 %v4192_v59  ;;  %v4216_v0 = vld [vmem:[%s5063_s7 + $0x10] sm:$0xff]   ;;  %3079 = vmatpush3.bf16.msra.mxu0 %v4204_v61  ;;  %v4235_v3 = vld [vmem:[%s5063_s7 + $0xe0] sm:$0xff]  }
 0x408   :  { %v1008_v7 = vadd.f32 %v1007_v4, %v1006_v2  ;;  %v908_v12 = vadd.f32 %v907_v5, %v906_v53  ;;  %3056 = vmatprep.subr.bf16.mxu1 %v4198_v60  ;;  %v4222_v2 = vld [vmem:[%s5063_s7 + $0x58] sm:$0xff]   ;;  %3080 = vmatprep.subr.bf16.mxu0 %v4211_v62  ;;  %v4246_v5 = vld [vmem:[%s5063_s7 + $0x60] sm:$0xff]  }
 0x409   :  { %v4105_v9 = vsub.f32 %v4081_v26, %v959_v6  ;;  %v4108_v10 = vsub.f32 %v4083_v28, %v959_v6  ;;  %v4228_v53 = vld [vmem:[%s5063_s7 + $0x98] sm:$0xff]   ;;  %v4252_v6 = vld [vmem:[%s5063_s7 + $0xa0] sm:$0xff]  }
 0x40a   :  { %v1009_v11 = vrot.slane %v1008_v7, 1  ;;  %v909_v20 = vrot.slane %v908_v12, 2  ;;  %v4240_v4 = vld [vmem:[%s5063_s7 + $0x18] sm:$0xff]  }
 0x40b   :  { %v962_v13 = vmul.f32 %v4105_v9, %v4105_v9  ;;  %v963_v14 = vmul.f32 %v4108_v10, %v4108_v10  ;;  %3057 = vmatpush3.bf16.msra.mxu1 %v4216_v0  ;;  %3081 = vmatpush3.bf16.msra.mxu0 %v4228_v53 }
 0x40c   :  { %v1010_v16 = vadd.f32 %v1009_v11, %v1008_v7  ;;  %v910_v24 = vadd.f32 %v909_v20, %v908_v12  ;;  %3058 = vmatprep.subr.bf16.mxu1 %v4222_v2  ;;  %3082 = vmatprep.subr.bf16.mxu0 %v4235_v3  ;;  %v4259_v7 = vld [vmem:[%s5063_s7 + $0xe8] sm:$0xff]   ;;  %v4264_v11 = vld [vmem:[%s5063_s7 + $0x20] sm:$0xff]  }
 0x40d   :  { %966 = vrot.lane.b32.xlu0 %v962_v13, %s3735_s28  ;;  %968 = vrot.lane.b32.xlu1 %v963_v14, %s3735_s28  ;;  %v4270_v12 = vld [vmem:[%s5063_s7 + $0x68] sm:$0xff]   ;;  %v4283_v14 = vld [vmem:[%s5063_s7 + $0xf0] sm:$0xff]  }
 0x40e   :  { %v1011_v17 = vmul.f32 0.0030864198, %v1010_v16  ;;  %v911_v27 = vrot.slane %v910_v24, 1  ;;  %v4276_v13 = vld [vmem:[%s5063_s7 + $0xa8] sm:$0xff]   ;;  %v4290_v16 = vld [vmem:[%s5063_s7 + $0xb0] sm:$0xff]  }
 0x40f   :  { %3059 = vmatpush3.bf16.msra.mxu1 %v4240_v4  ;;  %3083 = vmatpush3.bf16.msra.mxu0 %v4252_v6  ;;  %5087 = vst [vmem:[#allocation6_spill] sm:$0xff] %v4290_v16 }
 0x410   :  { %v4117_v21 = vsub.f32 %v4083_v28, %v1011_v17  ;;  %v4122_v23 = vsub.f32 %v4081_v26, %v1011_v17  ;;  %v912_v29 = vadd.f32 %v911_v27, %v910_v24  ;;  %3060 = vmatprep.subr.bf16.mxu1 %v4246_v5  ;;  %3084 = vmatprep.subr.bf16.mxu0 %v4259_v7 }
 0x412   :  { %v1015_v22 = vmul.f32 %v4117_v21, %v4117_v21  ;;  %v1014_v25 = vmul.f32 %v4122_v23, %v4122_v23  ;;  %v913_v30 = vmul.f32 0.0030864198, %v912_v29 }
 0x413   :  { %3061 = vmatpush3.bf16.msra.mxu1 %v4264_v11  ;;  %3085 = vmatpush3.bf16.msra.mxu0 %v4276_v13 }
 0x414   :  { %1020 = vrot.lane.b32.xlu1 %v1015_v22, %s3736_s29  ;;  %v4129_v31 = vsub.f32 %v4083_v28, %v913_v30  ;;  %v4134_v35 = vsub.f32 %v4081_v26, %v913_v30  ;;  %3062 = vmatprep.subr.bf16.mxu1 %v4270_v12 }
 0x415   :  { %3086 = vmatprep.subr.bf16.mxu0 %v4283_v14 }
 0x416   :  { %v917_v34 = vmul.f32 %v4129_v31, %v4129_v31  ;;  %v916_v39 = vmul.f32 %v4134_v35, %v4134_v35 }
 0x417   :  { %3087 = vmatpush3.bf16.msra.mxu0 %v4290_v16 }
 0x418   :  { %1018 = vrot.lane.b32.xlu1 %v1014_v25, %s3736_s29  ;;  %v921_v37 = vsel %vm901_vm7, %v917_v34, 0.0  ;;  %v918_v40 = vsel %vm897_vm6, %v916_v39, 0.0 }
 0x42c   :  { %922 = vadd.xlane.f32.xlu0 %v921_v37 }
 0x430   :  { %919 = vadd.xlane.f32.xlu0 %v918_v40 }
 0x47f   :  { %v967_v41 = vpop.permute.xlu0 %966  ;;  %v969_v42 = vpop.permute.xlu1 %968 }
 0x480   :  { %v972_v28 = vsel %vm897_vm6, %v967_v41, 0.0  ;;  %v975_v43 = vsel %vm901_vm7, %v969_v42, 0.0 }
 0x481   :  { %973 = vadd.xlane.f32.xlu0 %v972_v28  ;;  %976 = vadd.xlane.f32.xlu1 %v975_v43 }
 0x486   :  { %v1021_v45 = vpop.permute.xlu1 %1020 }
 0x487   :  { %v1027_v26 = vsel %vm901_vm7, %v1021_v45, 0.0 }
 0x488   :  { %1028 = vadd.xlane.f32.xlu1 %v1027_v26 }
 0x48a   :  { %v1019_v46 = vpop.permute.xlu1 %1018 }
 0x48b   :  { %v1024_v47 = vsel %vm897_vm6, %v1019_v46, 0.0 }
 0x48c   :  { %1025 = vadd.xlane.f32.xlu0 %v1024_v47 }
 0x4b9   :  { %v923_v17 = vpop.xlane.xlu0 %922 }
 0x4ba   :  { %v924_v22 = vsel %vm503_vm3, %v923_v17, 0.0 }
 0x4bd   :  { %v920_v20 = vpop.xlane.xlu0 %919 }
 0x4be   :  { %v925_v24 = vadd.f32 %v924_v22, %v920_v20 }
 0x4c0   :  { %v926_v25 = vrot.slane %v925_v24, 4 }
 0x4c2   :  { %v927_v27 = vadd.f32 %v926_v25, %v925_v24 }
 0x4c4   :  { %v928_v39 = vrot.slane %v927_v27, 2 }
 0x4c6   :  { %v929_v42 = vadd.f32 %v928_v39, %v927_v27 }
 0x4c8   :  { %v930_v26 = vrot.slane %v929_v42, 1 }
 0x4ca   :  { %v931_v25 = vadd.f32 %v930_v26, %v929_v42 }
 0x50e   :  { %v974_v29 = vpop.xlane.xlu0 %973  ;;  %v977_v30 = vpop.xlane.xlu1 %976 }
 0x50f   :  { %v978_v34 = vsel %vm503_vm3, %v977_v30, 0.0 }
 0x510   :  { %v979_v37 = vadd.f32 %v978_v34, %v974_v29  ;;  %v932_v29 = vmul.f32 0.0030864198, %v931_v25 }
 0x512   :  { %v980_v40 = vrot.slane %v979_v37, 4  ;;  %v933_v27 = vadd.f32 1e-05, %v932_v29 }
 0x514   :  { %v981_v41 = vadd.f32 %v980_v40, %v979_v37 }
 0x515   :  { %v1029_v43 = vpop.xlane.xlu1 %1028 }
 0x516   :  { %v982_v28 = vrot.slane %v981_v41, 2  ;;  %v1030_v46 = vsel %vm503_vm3, %v1029_v43, 0.0  ;;  %v4300_v43 = vld [vmem:[%s5063_s7 + $0x28] sm:$0xff]  }
 0x517   :  { %3063 = vmatpush3.bf16.msra.mxu1 %v4300_v43 }
 0x518   :  { %v983_v45 = vadd.f32 %v982_v28, %v981_v41 }
 0x519   :  { %v1026_v47 = vpop.xlane.xlu0 %1025 }
 0x51a   :  { %v984_v17 = vrot.slane %v983_v45, 1  ;;  %v1031_v20 = vadd.f32 %v1030_v46, %v1026_v47  ;;  %v4325_v46 = vld [vmem:[%s5063_s7 + $0x30] sm:$0xff]   ;;  %v2924_v47 = vld [vmem:[%s5061_s5] ss:$0 sm:$0xff] }
 0x51c   :  { %v985_v22 = vadd.f32 %v984_v17, %v983_v45  ;;  %v1032_v24 = vrot.slane %v1031_v20, 4 }
 0x51e   :  { %v1033_v1 = vadd.f32 %v1032_v24, %v1031_v20  ;;  %v986_v8 = vmul.f32 0.0030864198, %v985_v22  ;;  %v5090_v20 = vmov 0   ;;  %v4338_v22 = vld [vmem:[%s5063_s7 + $0x78] sm:$0xff]   ;;  %v2925_v24 = vld [vmem:[%s5062_s6] ss:$0 sm:$0xff] }
 0x520   :  { %v1034_v30 = vrot.slane %v1033_v1, 2  ;;  %v987_v16 = vadd.f32 1e-05, %v986_v8  ;;  %v4312_v8 = vld [vmem:[%s5063_s7 + $0x70] sm:$0xff]  }
 0x521   :  { %3064 = vmatprep.subr.bf16.mxu1 %v4312_v8 }
 0x522   :  { %v1035_v34 = vadd.f32 %v1034_v30, %v1033_v1  ;;  %3621 = vrsqrt.f32 %v987_v16  ;;  %v4307_v1 = vld [vmem:[%s5063_s7 + $0xf8] sm:$0xff]   ;;  %3065 = vmatpush3.bf16.msra.mxu1 %v4325_v46 }
 0x523   :  { %3623 = vrsqrt.f32 %v933_v27  ;;  %5088 = vst [vmem:[#allocation7_spill] sm:$0xff] %v4307_v1  ;;  %v4317_v16 = vld [vmem:[%s5063_s7 + $0xb8] sm:$0xff]   ;;  %3088 = vmatprep.subr.bf16.mxu0 %v4307_v1  ;;  %3066 = vmatprep.subr.bf16.mxu1 %v4338_v22 }
 0x524   :  { %v1036_v37 = vrot.slane %v1035_v34, 1  ;;  %5089 = vst [vmem:[#allocation8_spill] sm:$0xff] %v4317_v16  ;;  %3089 = vmatpush3.bf16.msra.mxu0 %v4317_v16  ;;  %v4348_v30 = vld [vmem:[%s5063_s7 + $0x38] sm:$0xff]  }
 0x525   :  { %1736 = vmatprep.subr.bf16.mxu0 %v5090_v20 }
 0x526   :  { %v1037_v39 = vadd.f32 %v1036_v37, %v1035_v34  ;;  %3067 = vmatpush3.bf16.msra.mxu1 %v4348_v30  ;;  %v4354_v34 = vld [vmem:[%s5063_s7 + $0x140] sm:$0xff]  }
 0x527   :  { %3096 = vmatprep.subr.bf16.mxu1 %v4354_v34 }
 0x528   :  { %v1038_v40 = vmul.f32 0.0030864198, %v1037_v39 }
 0x52a   :  { %v1039_v41 = vadd.f32 1e-05, %v1038_v40 }
 0x52c   :  { %3625 = vrsqrt.f32 %v1039_v41  ;;  %v3622_v28 = vpop.eup %3621 }
 0x52d   :  { %v3624_v42 = vpop.eup %3623  ;;  %v989_v45 = vmul.f32 %v3622_v28, %v4105_v9  ;;  %v990_v41 = vmul.f32 %v3622_v28, %v4108_v10 }
 0x52e   :  { %v935_v9 = vmul.f32 %v3624_v42, %v4134_v35 }
 0x530   :  { %v1043_v35 = vsel %vm897_vm6, %v935_v9, %v989_v45  ;;  %v936_v9 = vmul.f32 %v3624_v42, %v4129_v31 }
 0x536   :  { %v3626_v26 = vpop.eup %3625 }
 0x537   :  { %v1041_v17 = vmul.f32 %v3626_v26, %v4122_v23  ;;  %v1042_v45 = vmul.f32 %v3626_v26, %v4117_v21 }
 0x539   :  { %v1046_v25 = vsel %vm1045_vm8, %v1043_v35, %v1041_v17 }
 0x53a   :  { %v1054_v23 = vmul.f32 %v2924_v47, %v1046_v25  ;;  %v1044_v25 = vsel %vm897_vm6, %v936_v9, %v990_v41 }
 0x53c   :  { %v1062_v29 = vadd.f32 %v2925_v24, %v1054_v23  ;;  %v1047_v23 = vsel %vm1045_vm8, %v1044_v25, %v1042_v45 }
 0x53d   :  { %v1055_v21 = vmul.f32 %v2924_v47, %v1047_v23  ;;  %v3587_v23 = vld [vmem:[%s5063_s7 + $0x100] sm:$0xff]  }
 0x53e   :  { %v1077_v37 = vrot.slane %v1062_v29, 4  ;;  %v1073_v27 = vrot.slane %v1062_v29, 3  ;;  %v1081_v39 = vrot.slane %v1062_v29, 5  ;;  %v1069_v40 = vrot.slane %v1062_v29, 2 }
 0x53f   :  { %v1089_v17 = vrot.slane %v1062_v29, 7  ;;  %v1065_v35 = vrot.slane %v1062_v29, 1  ;;  %v1085_v10 = vrot.slane %v1062_v29, 6  ;;  %v1063_v28 = vadd.f32 %v2925_v24, %v1055_v21  ;;  %v3583_v24 = vld [vmem:[%s5063_s7 + $0x180] sm:$0xff]  }
 0x540   :  { %1078 = vrot.lane.b32.xlu0 %v1077_v37, %s3737_s22  ;;  %1074 = vrot.lane.b32.xlu1 %v1073_v27, %s3738_s23 }
 0x544   :  { %1082 = vrot.lane.b32.xlu0 %v1081_v39, %s3739_s24  ;;  %1070 = vrot.lane.b32.xlu1 %v1069_v40, %s3740_s25 }
 0x548   :  { %1090 = vrot.lane.b32.xlu0 %v1089_v17, %s3741_s26  ;;  %1066 = vrot.lane.b32.xlu1 %v1065_v35, %s3742_s30  ;;  %v3586_v17 = vld [vmem:[%s5063_s7 + $0x188] sm:$0xff]  }
 0x54c   :  { %1086 = vrot.lane.b32.xlu1 %v1085_v10, %s3743_s13 }
 0x550   :  { %1094 = vrot.lane.b32.xlu1 %v1063_v28, %s5073_s14 }
 0x5b2   :  { %v4370_v31 = vpop.permute.xlu0 %1078  ;;  %v1075_v42 = vpop.permute.xlu1 %1074 }
 0x5b3   :  { %v1104_v26 = vsel %vm1103_vm9, %v1075_v42, %v4370_v31 }
 0x5b4   :  { %v1116_v37 = vpack.c.bf16 %v1104_v26, %v1104_v26 }
 0x5b6   :  { %1688 = vmatprep.mubr.bf16.mxu0 %v1116_v37  ;;  %v1071_v27 = vpop.permute.xlu1 %1070  ;;  %v4378_v40 = vpop.permute.xlu0 %1082  ;;  %v3590_v37 = vld [vmem:[%s5063_s7 + $0x108] sm:$0xff]  }
 0x5b7   :  { %v1102_v47 = vsel %vm1101_vm10, %v1071_v27, %v1075_v42  ;;  %v3589_v42 = vld [vmem:[%s5063_s7 + $0x190] sm:$0xff]  }
 0x5b8   :  { %v1115_v39 = vpack.c.bf16 %v1102_v47, %v1102_v47  ;;  %v3591_v47 = vld [vmem:[%s5063_s7 + $0x150] sm:$0xff]  }
 0x5ba   :  { %1689 = vmatmul.mubr.bf16.vlgmr.msra.gmra.mrb[16].mxu0 %v1115_v39  ;;  %v1067_v41 = vpop.permute.xlu1 %1066  ;;  %v4392_v21 = vpop.permute.xlu0 %1090 }
 0x5bb   :  { %1737 = vmatpush1.bf16.msra.mxu0 %v3583_v24  ;;  %v1098_v45 = vsel %vm1097_vm11, %v1062_v29, %v1067_v41  ;;  %v1100_v9 = vsel %vm1099_vm12, %v1067_v41, %v1071_v27  ;;  %v3588_v29 = vld [vmem:[%s5063_s7 + $0x148] sm:$0xff]   ;;  %v3592_v41 = vld [vmem:[%s5063_s7 + $0x198] sm:$0xff]  }
 0x5bc   :  { %v1113_v35 = vpack.c.bf16 %v1098_v45, %v1098_v45  ;;  %v1114_v25 = vpack.c.bf16 %v1100_v9, %v1100_v9  ;;  %1738 = vmatprep.subr.bf16.mxu0 %v5090_v20  ;;  %v3593_v45 = vld [vmem:[%s5063_s7 + $0x110] sm:$0xff]   ;;  %v3594_v9 = vld [vmem:[%s5063_s7 + $0x158] sm:$0xff]  }
 0x5be   :  { %1648 = vmatprep.mubr.bf16.mxu1 %v1114_v25  ;;  %v1087_v10 = vpop.permute.xlu1 %1086  ;;  %v3597_v25 = vld [vmem:[%s5063_s7 + $0x160] sm:$0xff]  }
 0x5bf   :  { %1739 = vmatpush1.bf16.msra.mxu0 %v3586_v17  ;;  %v1108_v28 = vsel %vm1107_vm13, %v4378_v40, %v1087_v10  ;;  %1649 = vmatmul.mubr.bf16.vlgmr.msra.gmra.mrb[12].mxu1 %v1113_v35  ;;  %v3595_v17 = vld [vmem:[%s5063_s7 + $0x1a0] sm:$0xff]   ;;  %v3596_v35 = vld [vmem:[%s5063_s7 + $0x118] sm:$0xff]   ;;  %v3600_v10 = vld [vmem:[%s5063_s7 + $0x168] sm:$0xff]  }
 0x5c0   :  { %v1110_v26 = vsel %vm5076_vm14, %v1108_v28, %v4392_v21  ;;  %3097 = vmatpush3.bf16.msra.mxu1 %v3587_v23  ;;  %1740 = vmatprep.subr.bf16.mxu0 %v5090_v20  ;;  %v3598_v23 = vld [vmem:[%s5063_s7 + $0x1a8] sm:$0xff]   ;;  %v3601_v28 = vld [vmem:[%s5063_s7 + $0x1b0] sm:$0xff]   ;;  %vm1111_vm14 = vcmask 785408  }
 0x5c1   :  { %3098 = vmatprep.subr.bf16.mxu1 %v3588_v29  ;;  %v1118_v27 = vpack.c.bf16 %v1110_v26, %v1110_v26  ;;  %v3599_v29 = vld [vmem:[%s5063_s7 + $0x120] sm:$0xff]   ;;  %v3603_v26 = vld [vmem:[%s5063_s7 + $0x170] sm:$0xff]  }
 0x5c2   :  { %v4408_v24 = vpop.permute.xlu1 %1094 }
 0x5c3   :  { %1741 = vmatpush1.bf16.msra.mxu0 %v3589_v42  ;;  %v1120_v39 = vpack.c.bf16 %v4408_v24, %v4408_v24  ;;  %1728 = vmatprep.mubr.bf16.mxu1 %v1118_v27  ;;  %v3602_v42 = vld [vmem:[%s5063_s7 + $0x128] sm:$0xff]   ;;  %v3605_v27 = vld [vmem:[%s5063_s7 + $0x130] sm:$0xff]  }
 0x5c4   :  { %3099 = vmatpush3.bf16.msra.mxu1 %v3590_v37  ;;  %1742 = vmatprep.subr.bf16.mxu0 %v5090_v20  ;;  %v3604_v37 = vld [vmem:[%s5063_s7 + $0x1b8] sm:$0xff]  }
 0x5c5   :  { %2987 = vmatprep.mubr.msk.bf16.mxu0 %vm5074_vm15, %v1120_v39  ;;  %3100 = vmatprep.subr.bf16.mxu1 %v3591_v47  ;;  %v3606_v47 = vld [vmem:[%s5063_s7 + $0x178] sm:$0xff]   ;;  %vm5075_vm15 = vcmask 228352   ;;  %v3607_v39 = vld [vmem:[%s5063_s7 + $0x1c0] sm:$0xff]  }
 0x5c7   :  { %1743 = vmatpush1.bf16.msra.mxu0 %v3592_v41  ;;  %v3608_v41 = vld [vmem:[%s5063_s7 + $0x138] sm:$0xff]  }
 0x5c8   :  { %3101 = vmatpush3.bf16.msra.mxu1 %v3593_v45  ;;  %1744 = vmatprep.subr.bf16.mxu0 %v5090_v20  ;;  %v1106_v45 = vsel %vm5075_vm15, %v4370_v31, %v4378_v40  ;;  %v3611_v31 = vld [vmem:[%s5063_s7 + $0x1d8] sm:$0xff]   ;;  %v3612_v40 = vld [vmem:[%s5063_s7 + $0x1e0] sm:$0x3f]   ;;  %vm1612_vm15 = vcmask 1045504  }
 0x5c9   :  { %3102 = vmatprep.subr.bf16.mxu1 %v3594_v9  ;;  %v3609_v9 = vld [vmem:[%s5063_s7 + $0x1c8] sm:$0xff]  }
 0x5cb   :  { %1745 = vmatpush1.bf16.msra.mxu0 %v3595_v17  ;;  %v1117_v17 = vpack.c.bf16 %v1106_v45, %v1106_v45  ;;  %v4566_v45 = vld [vmem:[%s5056_s0 + $0x8] sm:$0x7f]  }
 0x5cc   :  { %3103 = vmatpush3.bf16.msra.mxu1 %v3596_v35  ;;  %1746 = vmatprep.subr.bf16.mxu0 %v5090_v20  ;;  %v5091_v35 = vmov 0.0  }
 0x5cd   :  { %3104 = vmatprep.subr.bf16.mxu1 %v3597_v25  ;;  %v3610_v25 = vld [vmem:[%s5063_s7 + $0x1d0] sm:$0xff]  }
 0x5cf   :  { %1747 = vmatpush1.bf16.msra.mxu0 %v3598_v23  ;;  %v4492_v23 = vsel %vm1612_vm15, %v3612_v40, 0  ;;  %vm1834_vm15 = vcmask 1041408  }
 0x5d0   :  { %3105 = vmatpush3.bf16.msra.mxu1 %v3599_v29  ;;  %1748 = vmatprep.subr.bf16.mxu0 %v5090_v20  ;;  %5092 = vst [vmem:[#allocation9_spill] sm:$0xff] %v4492_v23  ;;  %v1112_v29 = vsel %vm1111_vm14, %v4392_v21, %v4408_v24  ;;  %v3638_v21 = vld [vmem:[%s5057_s1 + $0x74] ss:$12 sps:$4 sm:$0xff]   ;;  %v3639_v24 = vld [vmem:[%s5057_s1 + $0x8c] ss:$12 sps:$4 sm:$0xff]  }
 0x5d1   :  { %3106 = vmatprep.subr.bf16.mxu1 %v3600_v10  ;;  %v1119_v10 = vpack.c.bf16 %v1112_v29, %v1112_v29  ;;  %v3641_v29 = vld [vmem:[%s5057_s1 + $0x8] ss:$12 sps:$4 sm:$0xff]  }
 0x5d3   :  { %1749 = vmatpush1.bf16.msra.mxu0 %v3601_v28  ;;  %v3637_v28 = vld [vmem:[%s5057_s1 + $0x5c] ss:$12 sps:$4 sm:$0xff]  }
 0x5d4   :  { %3107 = vmatpush3.bf16.msra.mxu1 %v3602_v42  ;;  %1750 = vmatprep.subr.bf16.mxu0 %v5090_v20  ;;  %v4518_v42 = vld [vmem:[%s5065_s9] sm:$0xff]  }
 0x5d5   :  { %3108 = vmatprep.subr.bf16.mxu1 %v3603_v26  ;;  %5093 = vst [vmem:[#allocation10_spill] sm:$0xff] %v4518_v42  ;;  %v4524_v26 = vld [vmem:[%s5065_s9 + $0x8] sm:$0xff]  }
 0x5d6   :  { %5094 = vst [vmem:[#allocation11_spill] sm:$0xff] %v4524_v26 }
 0x5d7   :  { %1751 = vmatpush1.bf16.msra.mxu0 %v3604_v37  ;;  %v4539_v37 = vld [vmem:[%s5065_s9 + $0x18] sm:$0xff]  }
 0x5d8   :  { %3109 = vmatpush3.bf16.msra.mxu1 %v3605_v27  ;;  %1752 = vmatprep.subr.bf16.mxu0 %v5090_v20  ;;  %5096 = vst [vmem:[#allocation13_spill] sm:$0xff] %v4539_v37  ;;  %v4545_v27 = vld [vmem:[%s5065_s9 + $0x20] sm:$0xff]  }
 0x5d9   :  { %3110 = vmatprep.subr.bf16.mxu1 %v3606_v47  ;;  %5097 = vst [vmem:[#allocation14_spill] sm:$0xff] %v4545_v27  ;;  %v4552_v47 = vld [vmem:[%s5065_s9 + $0x28] sm:$0xff]  }
 0x5da   :  { %5098 = vst [vmem:[#allocation15_spill] sm:$0xff] %v4552_v47 }
 0x5db   :  { %1753 = vmatpush1.bf16.msra.mxu0 %v3607_v39  ;;  %v3619_v39 = vld [vmem:[%s5065_s9 + $0x30] ss:$0 sps:$4 sm:$0x33]  }
 0x5dc   :  { %3111 = vmatpush3.bf16.msra.mxu1 %v3608_v41  ;;  %1754 = vmatprep.subr.bf16.mxu0 %v5090_v20  ;;  %v4560_v41 = vsel %vm1834_vm15, %v3619_v39, 0  ;;  %v3647_v39 = vld [vmem:[%s5059_s3 + $0x18] sm:$0xff]   ;;  %vm1830_vm15 = vcmask 818176  }
 0x5dd   :  { %3334 = vmatprep.subr.bf16.mxu1 %v5091_v35  ;;  %5099 = vst [vmem:[#allocation16_spill] sm:$0xff] %v4560_v41 }
 0x5df   :  { %1729 = vmatmul.mubr.bf16.vlgmr.msra.gmra.mrb[16].mxu1 %v1117_v17  ;;  %1755 = vmatpush1.bf16.msra.mxu0 %v3609_v9  ;;  %v3640_v9 = vld [vmem:[%s5057_s1 + $0x58] ss:$12 sps:$4 sm:$0xff]   ;;  %v1889_v17 = vshll.u32 %v4566_v45, 16 }
 0x5e0   :  { %1756 = vmatprep.subr.bf16.mxu0 %v5090_v20  ;;  %3348 = vmatprep.mubr.msk.bf16.mxu1 %vm3731_vm0, %v5091_v35 }
 0x5e1   :  { %3335 = vmatpush3.bf16.msra.mxu1 %v4518_v42 }
 0x5e2   :  { %3336 = vmatprep.subr.bf16.mxu1 %v5091_v35 }
 0x5e3   :  { %1757 = vmatpush1.bf16.msra.mxu0 %v3610_v25  ;;  %v1887_v25 = vshrl.u32 %v4566_v45, 16 }
 0x5e4   :  { %1758 = vmatprep.subr.bf16.mxu0 %v5090_v20 }
 0x5e5   :  { %3337 = vmatpush3.bf16.msra.mxu1 %v4524_v26 }
 0x5e6   :  { %3338 = vmatprep.subr.bf16.mxu1 %v5091_v35 }
 0x5e7   :  { %1759 = vmatpush1.bf16.msra.mxu0 %v3611_v31  ;;  %v1891_v31 = vrot.slane %v1889_v17, 1 }
 0x5e8   :  { %1760 = vmatprep.subr.bf16.mxu0 %v5090_v20 }
 0x5e9   :  { %v4573_v40 = vor.u32 %v1891_v31, %v1887_v25 }
 0x5eb   :  { %1761 = vmatpush1.bf16.msra.mxu0 %v4492_v23 }
 0x5ec   :  { %3352 = vmatprep.subr.bf16.mxu0 %v5091_v35 }
 0x5ee   :  { %1769 = vmatmul.mubr.bf16.vlgmr.msra.gmra.mrb[20].mxu0 %v1119_v10  ;;  %v3642_v10 = vld [vmem:[%s5057_s1 + $0x20] ss:$12 sps:$4 sm:$0xff]  }
 0x5ef   :  { %3353 = vmatpush3.bf16.msra.mxu0 %v3637_v28  ;;  %3360 = vmatprep.mubr.msk.bf16.mxu0 %vm3731_vm0, %v5091_v35  ;;  %v3643_v28 = vld [vmem:[%s5057_s1 + $0x38] ss:$12 sps:$4 sm:$0xff]  }
 0x5f0   :  { %3354 = vmatprep.subr.bf16.mxu0 %v5091_v35 }
 0x5f3   :  { %3355 = vmatpush3.bf16.msra.mxu0 %v3638_v21  ;;  %v3644_v21 = vld [vmem:[%s5059_s3] sm:$0xff]  }
 0x5f4   :  { %3356 = vmatprep.subr.bf16.mxu0 %v5091_v35 }
 0x5f7   :  { %3357 = vmatpush3.bf16.msra.mxu0 %v3639_v24  ;;  %v3645_v24 = vld [vmem:[%s5059_s3 + $0x8] sm:$0xff]  }
 0x5f8   :  { %3358 = vmatprep.subr.bf16.mxu0 %v5091_v35 }
 0x5fb   :  { %3359 = vmatpush3.bf16.msra.mxu0 %v3852_v18  ;;  %v4532_v18 = vld [vmem:[%s5065_s9 + $0x10] sm:$0xff]  }
 0x5fc   :  { %3364 = vmatprep.subr.bf16.mxu0 %v5091_v35  ;;  %5095 = vst [vmem:[#allocation12_spill] sm:$0xff] %v4532_v18  ;;  %3339 = vmatpush3.bf16.msra.mxu1 %v4532_v18 }
 0x5fd   :  { %3340 = vmatprep.subr.bf16.mxu1 %v5091_v35 }
 0x5fe   :  { %3361 = vmatmul.mubr.msk.bf16.vlgmr.msra.gmra.mrb[24].mxu0 %vm145_vm2, %v4573_v40 }
 0x5ff   :  { %3365 = vmatpush3.bf16.msra.mxu0 %v3641_v29  ;;  %3372 = vmatprep.mubr.msk.bf16.mxu0 %vm3731_vm0, %v5091_v35 }
 0x600   :  { %3341 = vmatpush3.bf16.msra.mxu1 %v4539_v37  ;;  %3366 = vmatprep.subr.bf16.mxu0 %v5091_v35 }
 0x601   :  { %3342 = vmatprep.subr.bf16.mxu1 %v5091_v35 }
 0x603   :  { %3367 = vmatpush3.bf16.msra.mxu0 %v3642_v10 }
 0x604   :  { %3343 = vmatpush3.bf16.msra.mxu1 %v4545_v27  ;;  %3368 = vmatprep.subr.bf16.mxu0 %v5091_v35 }
 0x605   :  { %3344 = vmatprep.subr.bf16.mxu1 %v5091_v35 }
 0x607   :  { %3369 = vmatpush3.bf16.msra.mxu0 %v3643_v28  ;;  %v4618_v28 = vld [vmem:[%s5064_s8] sm:$0x1] }
 0x608   :  { %3345 = vmatpush3.bf16.msra.mxu1 %v4552_v47  ;;  %3370 = vmatprep.subr.bf16.mxu0 %v5091_v35 }
 0x609   :  { %3346 = vmatprep.subr.bf16.mxu1 %v5091_v35 }
 0x60b   :  { %3371 = vmatpush3.bf16.msra.mxu0 %v3892_v32  ;;  %v3646_v32 = vld [vmem:[%s5059_s3 + $0x10] sm:$0xff]  }
 0x60c   :  { %3347 = vmatpush3.bf16.msra.mxu1 %v4560_v41  ;;  %3390 = vmatprep.subr.bf16.mxu0 %v5091_v35 }
 0x60d   :  { %1896 = vmatprep.subr.bf16.mxu1 %v3640_v9 }
 0x60e   :  { %3373 = vmatmul.mubr.msk.bf16.vlgmr.msra.gmra.mrb[24].mxu0 %vm145_vm2, %v4566_v45 }
 0x60f   :  { %3391 = vmatpush3.bf16.msra.mxu0 %v3644_v21  ;;  %3400 = vmatprep.mubr.msk.bf16.mxu0 %vm3731_vm0, %v5091_v35 }
 0x610   :  { %3392 = vmatprep.subr.bf16.mxu0 %v5091_v35 }
 0x613   :  { %3393 = vmatpush3.bf16.msra.mxu0 %v3645_v24 }
 0x614   :  { %3394 = vmatprep.subr.bf16.mxu0 %v5091_v35 }
 0x617   :  { %3395 = vmatpush3.bf16.msra.mxu0 %v3646_v32 }
 0x618   :  { %3396 = vmatprep.subr.bf16.mxu0 %v5091_v35 }
 0x61b   :  { %3397 = vmatpush3.bf16.msra.mxu0 %v3647_v39 }
 0x61c   :  { %3398 = vmatprep.subr.bf16.mxu0 %v5091_v35 }
 0x61f   :  { %3399 = vmatpush3.bf16.msra.mxu0 %v3964_v54 }
 0x620   :  { %3418 = vmatprep.subr.bf16.mxu0 %v5091_v35 }
 0x68d   :  { %v3090_v9 = vpop.f32.mrb[16].mxu0 }
 0x68e   :  { %v3091_v17 = vpop.f32.mrb[17].mxu0 }
 0x68f   :  { %v3092_v25 = vadd.f32 %v3091_v17, %v3090_v9  ;;  %v3093_v31 = vpop.f32.mrb[18].mxu0 }
 0x690   :  { %v3094_v29 = vpop.f32.mrb[19].mxu0 }
 0x692   :  { %v3068_v10 = vpop.f32.mrb[12].mxu1 }
 0x693   :  { %v3069_v21 = vpop.f32.mrb[13].mxu1 }
 0x694   :  { %v3070_v24 = vadd.f32 %v3069_v21, %v3068_v10  ;;  %v3071_v32 = vpop.f32.mrb[14].mxu1 }
 0x695   :  { %v3072_v39 = vpop.f32.mrb[15].mxu1 }
 0x696   :  { %v1651_v41 = vadd.f32 %v3070_v24, %v4618_v28 }
 0x698   :  { %v1691_v54 = vadd.f32 %v3092_v25, %v1651_v41  ;;  %v3648_v41 = vld [vmem:[%s5057_s1 + $0x54] ss:$12 sps:$4 sm:$0xff]  }
 0x6b2   :  { %v3112_v47 = vpop.f32.mrb[16].mxu1 }
 0x6b3   :  { %v3113_v27 = vpop.f32.mrb[17].mxu1 }
 0x6b4   :  { %v3114_v37 = vadd.f32 %v3113_v27, %v3112_v47  ;;  %v3115_v23 = vpop.f32.mrb[18].mxu1  ;;  %v3658_v27 = vld [vmem:[%s5057_s1 + $0x30] ss:$12 sps:$4 sm:$0xff]   ;;  %v3659_v47 = vld [vmem:[%s5059_s3 + $0x24] sm:$0xff]  }
 0x6b5   :  { %v3116_v9 = vpop.f32.mrb[19].mxu1  ;;  %v3649_v23 = vld [vmem:[%s5057_s1 + $0x70] ss:$12 sps:$4 sm:$0xff]  }
 0x6b6   :  { %v1731_v17 = vadd.f32 %v3114_v37, %v1691_v54  ;;  %v3657_v37 = vld [vmem:[%s5057_s1 + $0x34] ss:$12 sps:$4 sm:$0xff]  }
 0x6c1   :  { %v1770_v31 = vpop.f32.mrb[20].mxu0 }
 0x6c2   :  { %v1771_v29 = vadd.f32 %v1770_v31, %v1731_v17  ;;  %v1772_v18 = vpop.f32.mrb[21].mxu0 }
 0x6c3   :  { %v1773_v26 = vpop.f32.mrb[22].mxu0  ;;  %v3654_v18 = vld [vmem:[%s5057_s1] ss:$12 sps:$4 sm:$0xff]  }
 0x6c4   :  { %v1776_v42 = vmax.f32 %v1771_v29, 0.0  ;;  %v1774_v16 = vpop.f32.mrb[23].mxu0  ;;  %v3653_v26 = vld [vmem:[%s5057_s1 + $0x4] ss:$12 sps:$4 sm:$0xff]  }
 0x6c5   :  { %v3650_v16 = vld [vmem:[%s5057_s1 + $0x6c] ss:$12 sps:$4 sm:$0xff]  }
 0x6c6   :  { %v1777_v1 = vpack.c.bf16 %v1776_v42, %v1776_v42  ;;  %v3652_v42 = vld [vmem:[%s5057_s1 + $0x84] ss:$12 sps:$4 sm:$0xff]  }
 0x6c8   :  { %3349 = vmatmul.mubr.msk.bf16.vlgmr.msra.gmra.mrb[20].mxu1 %vm1830_vm15, %v1777_v1  ;;  %v3651_v1 = vld [vmem:[%s5057_s1 + $0x88] ss:$12 sps:$4 sm:$0xff]  }
 0x6c9   :  { %1897 = vmatpush1.bf16.msra.mxu1 %v3648_v41  ;;  %1928 = vmatprep.mubr.bf16.mxu1 %v5090_v20 }
 0x6ca   :  { %1898 = vmatprep.subr.bf16.mxu1 %v3649_v23 }
 0x6cd   :  { %1899 = vmatpush1.bf16.msra.mxu1 %v3650_v16 }
 0x6ce   :  { %1900 = vmatprep.subr.bf16.mxu1 %v3651_v1 }
 0x6d1   :  { %1901 = vmatpush1.bf16.msra.mxu1 %v3652_v42 }
 0x6d2   :  { %2999 = vmatprep.subr.msk.bf16.mxu1 %vm149_vm1, %v3848_v15  ;;  %v3655_v15 = vld [vmem:[%s5057_s1 + $0x1c] ss:$12 sps:$4 sm:$0xff]  }
 0x6d5   :  { %1903 = vmatpush1.bf16.msra.mxu1 %v3855_v19  ;;  %v3656_v19 = vld [vmem:[%s5057_s1 + $0x18] ss:$12 sps:$4 sm:$0xff]  }
 0x6d6   :  { %1982 = vmatprep.subr.bf16.mxu1 %v3653_v26 }
 0x6d8   :  { %3000 = vmatmul.mubr.msk.bf16.vlgmr.msra.gmra.mrb[24].mxu1 %vm145_vm2, %v4573_v40 }
 0x6d9   :  { %1983 = vmatpush1.bf16.msra.mxu1 %v3654_v18  ;;  %2014 = vmatprep.mubr.bf16.mxu1 %v5090_v20 }
 0x6da   :  { %1984 = vmatprep.subr.bf16.mxu1 %v3655_v15 }
 0x6dd   :  { %1985 = vmatpush1.bf16.msra.mxu1 %v3656_v19 }
 0x6de   :  { %1986 = vmatprep.subr.bf16.mxu1 %v3657_v37 }
 0x6e1   :  { %1987 = vmatpush1.bf16.msra.mxu1 %v3658_v27  ;;  %v2059_v40 = vpop.f32.mrb[24].mxu0 }
 0x6e2   :  { %3002 = vmatprep.subr.msk.bf16.mxu1 %vm149_vm1, %v3908_v36  ;;  %v3660_v36 = vld [vmem:[%s5059_s3 + $0x2c] sm:$0xff]   ;;  %v3374_v25 = vpop.f32.mrb[25].mxu0  ;;  %vm5104_vm1 = vcmask 949248  }
 0x6e3   :  { %v2062_v10 = vpop.f32.mrb[26].mxu0  ;;  %v3663_v25 = vld [vmem:[%s5058_s2] ss:$0 sm:$0xff] }
 0x6e4   :  { %v3375_v21 = vpop.f32.mrb[27].mxu0 }
 0x6e5   :  { %1989 = vmatpush1.bf16.msra.mxu1 %v3895_v33  ;;  %v3661_v33 = vld [vmem:[%s5059_s3 + $0x34] sm:$0xff]  }
 0x6e6   :  { %3376 = vmatprep.subr.bf16.mxu1 %v5091_v35 }
 0x6e8   :  { %3003 = vmatmul.mubr.msk.bf16.vlgmr.msra.gmra.mrb[24].mxu1 %vm145_vm2, %v4566_v45  ;;  %v3662_v45 = vld [vmem:[%s5059_s3 + $0x3c] sm:$0xff]   ;;  %vm5105_vm2 = vcmask 621568  }
 0x6e9   :  { %3377 = vmatpush3.bf16.msra.mxu1 %v3659_v47  ;;  %3386 = vmatprep.mubr.msk.bf16.mxu1 %vm3731_vm0, %v5091_v35 }
 0x6ea   :  { %3378 = vmatprep.subr.bf16.mxu1 %v5091_v35 }
 0x6ed   :  { %3379 = vmatpush3.bf16.msra.mxu1 %v3660_v36 }
 0x6ee   :  { %3380 = vmatprep.subr.bf16.mxu1 %v5091_v35 }
 0x6f1   :  { %3381 = vmatpush3.bf16.msra.mxu1 %v3661_v33 }
 0x6f2   :  { %3382 = vmatprep.subr.bf16.mxu1 %v5091_v35 }
 0x6f5   :  { %3383 = vmatpush3.bf16.msra.mxu1 %v3662_v45 }
 0x6f6   :  { %3384 = vmatprep.subr.bf16.mxu1 %v5091_v35 }
 0x6f9   :  { %3385 = vmatpush3.bf16.msra.mxu1 %v3979_v63 }
 0x6fa   :  { %3404 = vmatprep.subr.bf16.mxu1 %v5091_v35 }
 0x79b   :  { %v4688_v24 = vpop.f32.mrb[20].mxu1 }
 0x79c   :  { %v3350_v32 = vpop.f32.mrb[21].mxu1 }
 0x79d   :  { %v1875_v39 = vpop.f32.mrb[22].mxu1 }
 0x79e   :  { %v3351_v54 = vpop.f32.mrb[23].mxu1 }
 0x7bb   :  { %v2016_v9 = vpop.f32.mrb[24].mxu1 }
 0x7bc   :  { %v2018_v17 = vpop.f32.mrb[25].mxu1 }
 0x7bd   :  { %2072 = vrot.lane.b32.xlu0 %v2018_v17, %s3733_s12  ;;  %v2020_v31 = vpop.f32.mrb[26].mxu1 }
 0x7be   :  { %v2022_v29 = vpop.f32.mrb[27].mxu1 }
 0x7bf   :  { %2076 = vrot.lane.b32.xlu1 %v2022_v29, %s3733_s12 }
 0x7c1   :  { %2086 = vrot.lane.b32.xlu0 %v2059_v40, %s3733_s12 }
 0x7c3   :  { %2088 = vrot.lane.b32.xlu1 %v2062_v10, %s3733_s12 }
 0x7c5   :  { %2070 = vrot.lane.b32.xlu0 %v2016_v9, %s3733_s12 }
 0x7c7   :  { %2074 = vrot.lane.b32.xlu1 %v2020_v31, %s3733_s12 }
 0x82f   :  { %v2073_v63 = vpop.permute.xlu0 %2072 }
 0x831   :  { %v2077_v41 = vpop.permute.xlu1 %2076 }
 0x833   :  { %v2087_v23 = vpop.permute.xlu0 %2086 }
 0x834   :  { %v2090_v16 = vsel %vm406_vm4, %v2073_v63, %v2087_v23  ;;  %v3665_v23 = vld [vmem:[%s5059_s3 + $0x74] sm:$0xff]  }
 0x835   :  { %v2094_v1 = vmax.f32 %v2018_v17, %v2090_v16  ;;  %v2089_v42 = vpop.permute.xlu1 %2088  ;;  %v3666_v16 = vld [vmem:[%s5059_s3 + $0x48] sm:$0xff]  }
 0x836   :  { %v2091_v26 = vsel %vm406_vm4, %v2077_v41, %v2089_v42  ;;  %v3668_v42 = vld [vmem:[%s5059_s3 + $0x50] sm:$0xff]  }
 0x837   :  { %v2095_v18 = vmax.f32 %v2022_v29, %v2091_v26  ;;  %2098 = vrot.lane.b32.xlu0 %v2094_v1, %s3734_s27  ;;  %v2071_v15 = vpop.permute.xlu0 %2070  ;;  %v3667_v1 = vld [vmem:[%s5059_s3 + $0x7c] sm:$0xff]   ;;  %v3669_v26 = vld [vmem:[%s5059_s3 + $0x84] sm:$0xff]  }
 0x838   :  { %v2078_v19 = vsel %vm406_vm4, %v2071_v15, %v2073_v63 }
 0x839   :  { %2100 = vrot.lane.b32.xlu1 %v2095_v18, %s3734_s27  ;;  %v2075_v37 = vpop.permute.xlu1 %2074  ;;  %v2082_v27 = vmax.f32 %v2016_v9, %v2078_v19  ;;  %v3670_v19 = vld [vmem:[%s5059_s3 + $0x58] sm:$0xff]  }
 0x83a   :  { %v2079_v47 = vsel %vm406_vm4, %v2075_v37, %v2077_v41  ;;  %vm5106_vm4 = vcmask 228352  }
 0x83b   :  { %v2083_v36 = vmax.f32 %v2020_v31, %v2079_v47  ;;  %v3664_v31 = vld [vmem:[%s5059_s3 + $0x6c] sm:$0xff]  }
 0x8a9   :  { %v2099_v33 = vpop.permute.xlu0 %2098 }
 0x8aa   :  { %v2104_v45 = vmax.f32 %v2082_v27, %v2099_v33  ;;  %v3671_v27 = vld [vmem:[%s5059_s3 + $0x60] sm:$0xff]  }
 0x8ab   :  { %v2101_v40 = vpop.permute.xlu1 %2100  ;;  %v3676_v33 = vld [vmem:[%s5060_s4] ss:$0 sm:$0xff] }
 0x8ac   :  { %v2106_v10 = vadd.f32 %v3663_v25, %v2104_v45  ;;  %v2105_v21 = vmax.f32 %v2083_v36, %v2101_v40 }
 0x8ae   :  { %v2107_v32 = vadd.f32 %v3663_v25, %v2105_v21  ;;  %v2108_v39 = vmax.f32 %v2106_v10, 0.0 }
 0x8b0   :  { %v2109_v54 = vmax.f32 %v2107_v32, 0.0 }
 0x8b2   :  { %v4705_v17 = vpack.c.bf16 %v2109_v54, %v2108_v39 }
 0x8b4   :  { %3401 = vmatmul.mubr.msk.bf16.vlgmr.msra.gmra.mrb[28].mxu0 %vm499_vm5, %v4705_v17  ;;  %v2114_v9 = vshll.u32 %v4705_v17, 16  ;;  %v2112_v29 = vshrl.u32 %v4705_v17, 16 }
 0x8b5   :  { %3419 = vmatpush3.bf16.msra.mxu0 %v3664_v31  ;;  %3428 = vmatprep.mubr.msk.bf16.mxu0 %vm3731_vm0, %v5091_v35 }
 0x8b6   :  { %3420 = vmatprep.subr.bf16.mxu0 %v5091_v35  ;;  %v2116_v63 = vrot.slane %v2114_v9, 1  ;;  %v2253_v18 = vrot.slane %v2112_v29, 1  ;;  %v2254_v15 = vrot.slane %v2114_v9, 2 }
 0x8b8   :  { %v2117_v41 = vor.u32 %v2116_v63, %v2112_v29  ;;  %v2255_v37 = vor.u32 %v2254_v15, %v2253_v18 }
 0x8b9   :  { %3421 = vmatpush3.bf16.msra.mxu0 %v3665_v23 }
 0x8ba   :  { %3387 = vmatmul.mubr.msk.bf16.vlgmr.msra.gmra.mrb[28].mxu1 %vm499_vm5, %v2117_v41  ;;  %3422 = vmatprep.subr.bf16.mxu0 %v5091_v35 }
 0x8bb   :  { %3405 = vmatpush3.bf16.msra.mxu1 %v3666_v16  ;;  %3414 = vmatprep.mubr.msk.bf16.mxu1 %vm3731_vm0, %v5091_v35 }
 0x8bc   :  { %3406 = vmatprep.subr.bf16.mxu1 %v5091_v35 }
 0x8bd   :  { %3423 = vmatpush3.bf16.msra.mxu0 %v3667_v1 }
 0x8be   :  { %3424 = vmatprep.subr.bf16.mxu0 %v5091_v35 }
 0x8bf   :  { %3407 = vmatpush3.bf16.msra.mxu1 %v3668_v42 }
 0x8c0   :  { %3408 = vmatprep.subr.bf16.mxu1 %v5091_v35 }
 0x8c1   :  { %3425 = vmatpush3.bf16.msra.mxu0 %v3669_v26 }
 0x8c2   :  { %3426 = vmatprep.subr.bf16.mxu0 %v5091_v35 }
 0x8c3   :  { %3409 = vmatpush3.bf16.msra.mxu1 %v3670_v19 }
 0x8c4   :  { %3410 = vmatprep.subr.bf16.mxu1 %v5091_v35 }
 0x8c5   :  { %3427 = vmatpush3.bf16.msra.mxu0 %v4031_v38  ;;  %v2206_v38 = vrot.slane %v4705_v17, 1 }
 0x8c6   :  { %3166 = vmatprep.subr.bf16.mxu0 %v4162_v52  ;;  %v3672_v52 = vld [vmem:[%s5059_s3 + $0x90] sm:$0xff]  }
 0x8c7   :  { %3411 = vmatpush3.bf16.msra.mxu1 %v3671_v27 }
 0x8c8   :  { %3429 = vmatmul.mubr.msk.bf16.vlgmr.msra.gmra.mrb[32].mxu0 %vm499_vm5, %v2255_v37  ;;  %3412 = vmatprep.subr.bf16.mxu1 %v5091_v35 }
 0x8c9   :  { %3167 = vmatpush3.bf16.msra.mxu0 %v4167_v55  ;;  %v3674_v55 = vld [vmem:[%s5059_s3 + $0xa0] sm:$0xff]  }
 0x8ca   :  { %3168 = vmatprep.subr.bf16.mxu0 %v4173_v56  ;;  %v3675_v56 = vld [vmem:[%s5059_s3 + $0xa8] sm:$0xff]  }
 0x8cb   :  { %3413 = vmatpush3.bf16.msra.mxu1 %v4043_v44  ;;  %v3673_v44 = vld [vmem:[%s5059_s3 + $0x98] sm:$0xff]  }
 0x8cc   :  { %3432 = vmatprep.subr.bf16.mxu1 %v5091_v35 }
 0x8cd   :  { %3169 = vmatpush3.bf16.msra.mxu0 %v4192_v59  ;;  %v2302_v59 = vrot.slane %v4705_v17, 2 }
 0x8ce   :  { %3415 = vmatmul.mubr.msk.bf16.vlgmr.msra.gmra.mrb[32].mxu1 %vm499_vm5, %v2206_v38  ;;  %3170 = vmatprep.subr.bf16.mxu0 %v4198_v60 }
 0x8cf   :  { %3433 = vmatpush3.bf16.msra.mxu1 %v3672_v52  ;;  %3442 = vmatprep.mubr.msk.bf16.mxu1 %vm3731_vm0, %v5091_v35 }
 0x8d0   :  { %3434 = vmatprep.subr.bf16.mxu1 %v5091_v35 }
 0x8d1   :  { %3171 = vmatpush3.bf16.msra.mxu0 %v4216_v0 }
 0x8d2   :  { %3172 = vmatprep.subr.bf16.mxu0 %v4222_v2 }
 0x8d3   :  { %3435 = vmatpush3.bf16.msra.mxu1 %v3673_v44 }
 0x8d4   :  { %3436 = vmatprep.subr.bf16.mxu1 %v5091_v35 }
 0x8d5   :  { %3173 = vmatpush3.bf16.msra.mxu0 %v4240_v4 }
 0x8d6   :  { %3174 = vmatprep.subr.bf16.mxu0 %v4246_v5 }
 0x8d7   :  { %3437 = vmatpush3.bf16.msra.mxu1 %v3674_v55 }
 0x8d8   :  { %3438 = vmatprep.subr.bf16.mxu1 %v5091_v35 }
 0x8d9   :  { %3175 = vmatpush3.bf16.msra.mxu0 %v4264_v11 }
 0x8da   :  { %3176 = vmatprep.subr.bf16.mxu0 %v4270_v12 }
 0x8db   :  { %3439 = vmatpush3.bf16.msra.mxu1 %v3675_v56 }
 0x8dc   :  { %3440 = vmatprep.subr.bf16.mxu1 %v5091_v35 }
 0x8dd   :  { %3177 = vmatpush3.bf16.msra.mxu0 %v4300_v43 }
 0x8de   :  { %3178 = vmatprep.subr.bf16.mxu0 %v4312_v8 }
 0x8df   :  { %3441 = vmatpush3.bf16.msra.mxu1 %v4072_v51  ;;  %v5100_v51 = vld [vmem:[#allocation6_spill] sm:$0xff] }
 0x8e0   :  { %3188 = vmatprep.subr.bf16.mxu1 %v4147_v48  ;;  %v5101_v48 = vld [vmem:[#allocation7_spill] sm:$0xff] }
 0x8e1   :  { %3179 = vmatpush3.bf16.msra.mxu0 %v4325_v46 }
 0x8e2   :  { %3443 = vmatmul.mubr.msk.bf16.vlgmr.msra.gmra.mrb[36].mxu1 %vm499_vm5, %v2302_v59  ;;  %3180 = vmatprep.subr.bf16.mxu0 %v4338_v22 }
 0x8e3   :  { %3189 = vmatpush3.bf16.msra.mxu1 %v4152_v49  ;;  %v5102_v49 = vld [vmem:[#allocation8_spill] sm:$0xff] }
 0x8e4   :  { %3190 = vmatprep.subr.bf16.mxu1 %v4157_v50 }
 0x8e5   :  { %3181 = vmatpush3.bf16.msra.mxu0 %v4348_v30 }
 0x8e6   :  { %3210 = vmatprep.subr.bf16.mxu0 %v4354_v34 }
 0x8e7   :  { %3191 = vmatpush3.bf16.msra.mxu1 %v4180_v57 }
 0x8e8   :  { %3192 = vmatprep.subr.bf16.mxu1 %v4187_v58 }
 0x8eb   :  { %3193 = vmatpush3.bf16.msra.mxu1 %v4204_v61 }
 0x8ec   :  { %3194 = vmatprep.subr.bf16.mxu1 %v4211_v62 }
 0x8ef   :  { %3195 = vmatpush3.bf16.msra.mxu1 %v4228_v53 }
 0x8f0   :  { %3196 = vmatprep.subr.bf16.mxu1 %v4235_v3 }
 0x8f3   :  { %3197 = vmatpush3.bf16.msra.mxu1 %v4252_v6 }
 0x8f4   :  { %3198 = vmatprep.subr.bf16.mxu1 %v4259_v7 }
 0x8f7   :  { %3199 = vmatpush3.bf16.msra.mxu1 %v4276_v13 }
 0x8f8   :  { %3200 = vmatprep.subr.bf16.mxu1 %v4283_v14 }
 0x8fb   :  { %3201 = vmatpush3.bf16.msra.mxu1 %v5100_v51 }
 0x8fc   :  { %3202 = vmatprep.subr.bf16.mxu1 %v5101_v48 }
 0x8ff   :  { %3203 = vmatpush3.bf16.msra.mxu1 %v5102_v49 }
 0x900   :  { %2677 = vmatprep.subr.bf16.mxu1 %v5090_v20 }
 0x987   :  { %v2198_v50 = vpop.f32.mrb[28].mxu0 }
 0x988   :  { %v3402_v57 = vpop.f32.mrb[29].mxu0 }
 0x989   :  { %v2201_v58 = vpop.f32.mrb[30].mxu0 }
 0x98a   :  { %v3403_v60 = vpop.f32.mrb[31].mxu0 }
 0x98d   :  { %v2155_v61 = vpop.f32.mrb[28].mxu1 }
 0x98e   :  { %v2199_v62 = vadd.f32 %v2198_v50, %v2155_v61  ;;  %v3388_v0 = vpop.f32.mrb[29].mxu1 }
 0x98f   :  { %v2158_v2 = vpop.f32.mrb[30].mxu1 }
 0x990   :  { %v2202_v53 = vadd.f32 %v2201_v58, %v2158_v2  ;;  %v3389_v3 = vpop.f32.mrb[31].mxu1 }
 0x99b   :  { %v2293_v4 = vpop.f32.mrb[32].mxu0 }
 0x99c   :  { %v3430_v5 = vpop.f32.mrb[33].mxu0 }
 0x99d   :  { %v2296_v6 = vpop.f32.mrb[34].mxu0 }
 0x99e   :  { %v3431_v7 = vpop.f32.mrb[35].mxu0 }
 0x9a1   :  { %v2244_v11 = vpop.f32.mrb[32].mxu1 }
 0x9a2   :  { %v2251_v12 = vadd.f32 %v2244_v11, %v2199_v62  ;;  %v3416_v13 = vpop.f32.mrb[33].mxu1 }
 0x9a3   :  { %v2247_v14 = vpop.f32.mrb[34].mxu1 }
 0x9a4   :  { %v2252_v43 = vadd.f32 %v2247_v14, %v2202_v53  ;;  %v3417_v8 = vpop.f32.mrb[35].mxu1  ;;  %v2300_v46 = vadd.f32 %v2293_v4, %v2251_v12 }
 0x9a6   :  { %v2301_v22 = vadd.f32 %v2296_v6, %v2252_v43 }
 0x9b5   :  { %v2340_v30 = vpop.f32.mrb[36].mxu1 }
 0x9b6   :  { %v2347_v34 = vadd.f32 %v2340_v30, %v2300_v46  ;;  %v3444_v47 = vpop.f32.mrb[37].mxu1 }
 0x9b7   :  { %v2343_v36 = vpop.f32.mrb[38].mxu1 }
 0x9b8   :  { %v2349_v45 = vadd.f32 %v3676_v33, %v2347_v34  ;;  %v2348_v40 = vadd.f32 %v2343_v36, %v2301_v22  ;;  %v3445_v25 = vpop.f32.mrb[39].mxu1 }
 0x9ba   :  { %v4812_v10 = vmax.f32 %v2349_v45, 0.0  ;;  %v2350_v21 = vadd.f32 %v3676_v33, %v2348_v40 }
 0x9bc   :  { %v4814_v32 = vmax.f32 %v2350_v21, 0.0  ;;  %2393 = vrot.lane.b32.xlu1 %v4812_v10, %s3735_s28  ;;  %v2353_v16 = vsel %vm897_vm6, %v4812_v10, 0.0 }
 0x9be   :  { %2395 = vrot.lane.b32.xlu0 %v4814_v32, %s3735_s28  ;;  %v2356_v31 = vsel %vm901_vm7, %v4814_v32, 0.0 }
 0x9c0   :  { %2445 = vrot.lane.b32.xlu1 %v4812_v10, %s3736_s29 }
 0x9c2   :  { %2447 = vrot.lane.b32.xlu0 %v4814_v32, %s3736_s29 }
 0xa2e   :  { %v2394_v39 = vpop.permute.xlu1 %2393 }
 0xa2f   :  { %v2399_v54 = vsel %vm897_vm6, %v2394_v39, 0.0 }
 0xa30   :  { %2400 = vadd.xlane.f32.xlu1 %v2399_v54  ;;  %v2396_v17 = vpop.permute.xlu0 %2395 }
 0xa31   :  { %v2402_v9 = vsel %vm901_vm7, %v2396_v17, 0.0 }
 0xa32   :  { %2403 = vadd.xlane.f32.xlu0 %v2402_v9  ;;  %v2446_v41 = vpop.permute.xlu1 %2445 }
 0xa33   :  { %v2451_v23 = vsel %vm897_vm6, %v2446_v41, 0.0 }
 0xa34   :  { %v2448_v29 = vpop.permute.xlu0 %2447  ;;  %2357 = vadd.xlane.f32.xlu1 %v2356_v31 }
 0xa35   :  { %v2454_v63 = vsel %vm901_vm7, %v2448_v29, 0.0 }
 0xa36   :  { %2455 = vadd.xlane.f32.xlu0 %v2454_v63 }
 0xa3a   :  { %2452 = vadd.xlane.f32.xlu0 %v2451_v23 }
 0xa3e   :  { %2354 = vadd.xlane.f32.xlu0 %v2353_v16 }
 0xabd   :  { %v2401_v42 = vpop.xlane.xlu1 %2400 }
 0xabf   :  { %v2404_v1 = vpop.xlane.xlu0 %2403 }
 0xac0   :  { %v2405_v26 = vsel %vm503_vm3, %v2404_v1, 0.0 }
 0xac1   :  { %v2406_v18 = vadd.f32 %v2405_v26, %v2401_v42  ;;  %v2358_v44 = vpop.xlane.xlu1 %2357 }
 0xac2   :  { %v2359_v48 = vsel %vm503_vm3, %v2358_v44, 0.0 }
 0xac3   :  { %v2407_v15 = vrot.slane %v2406_v18, 4  ;;  %v2456_v19 = vpop.xlane.xlu0 %2455 }
 0xac4   :  { %v2457_v38 = vsel %vm503_vm3, %v2456_v19, 0.0 }
 0xac5   :  { %v2408_v37 = vadd.f32 %v2407_v15, %v2406_v18 }
 0xac7   :  { %v2409_v27 = vrot.slane %v2408_v37, 2  ;;  %v2453_v52 = vpop.xlane.xlu0 %2452 }
 0xac8   :  { %v2458_v55 = vadd.f32 %v2457_v38, %v2453_v52 }
 0xac9   :  { %v2410_v56 = vadd.f32 %v2409_v27, %v2408_v37 }
 0xaca   :  { %v2459_v59 = vrot.slane %v2458_v55, 4 }
 0xacb   :  { %v2411_v51 = vrot.slane %v2410_v56, 1  ;;  %v2355_v49 = vpop.xlane.xlu0 %2354 }
 0xacc   :  { %v2460_v50 = vadd.f32 %v2459_v59, %v2458_v55  ;;  %v2360_v57 = vadd.f32 %v2359_v48, %v2355_v49 }
 0xacd   :  { %v2412_v58 = vadd.f32 %v2411_v51, %v2410_v56 }
 0xace   :  { %v2461_v60 = vrot.slane %v2460_v50, 2  ;;  %v2361_v61 = vrot.slane %v2360_v57, 4 }
 0xacf   :  { %v2413_v62 = vmul.f32 0.0030864198, %v2412_v58 }
 0xad0   :  { %v2462_v0 = vadd.f32 %v2461_v60, %v2460_v50  ;;  %v2362_v4 = vadd.f32 %v2361_v61, %v2360_v57 }
 0xad1   :  { %v4836_v2 = vsub.f32 %v4812_v10, %v2413_v62  ;;  %v4839_v53 = vsub.f32 %v4814_v32, %v2413_v62 }
 0xad2   :  { %v2463_v3 = vrot.slane %v2462_v0, 1  ;;  %v2363_v12 = vrot.slane %v2362_v4, 2 }
 0xad3   :  { %v2416_v5 = vmul.f32 %v4836_v2, %v4836_v2  ;;  %v2417_v6 = vmul.f32 %v4839_v53, %v4839_v53 }
 0xad4   :  { %v2464_v7 = vadd.f32 %v2463_v3, %v2462_v0  ;;  %v2364_v8 = vadd.f32 %v2363_v12, %v2362_v4 }
 0xad5   :  { %2420 = vrot.lane.b32.xlu0 %v2416_v5, %s3735_s28  ;;  %2422 = vrot.lane.b32.xlu1 %v2417_v6, %s3735_s28 }
 0xad6   :  { %v2465_v11 = vmul.f32 0.0030864198, %v2464_v7  ;;  %v2365_v22 = vrot.slane %v2364_v8, 1 }
 0xad8   :  { %v4848_v13 = vsub.f32 %v4814_v32, %v2465_v11  ;;  %v4853_v43 = vsub.f32 %v4812_v10, %v2465_v11  ;;  %v2366_v30 = vadd.f32 %v2365_v22, %v2364_v8 }
 0xada   :  { %v2469_v14 = vmul.f32 %v4848_v13, %v4848_v13  ;;  %v2468_v46 = vmul.f32 %v4853_v43, %v4853_v43  ;;  %v2367_v34 = vmul.f32 0.0030864198, %v2366_v30 }
 0xadc   :  { %2474 = vrot.lane.b32.xlu1 %v2469_v14, %s3736_s29  ;;  %v4860_v47 = vsub.f32 %v4814_v32, %v2367_v34  ;;  %v2368_v33 = vsub.f32 %v4812_v10, %v2367_v34 }
 0xade   :  { %v2371_v36 = vmul.f32 %v4860_v47, %v4860_v47  ;;  %v2370_v40 = vmul.f32 %v2368_v33, %v2368_v33 }
 0xae0   :  { %2472 = vrot.lane.b32.xlu1 %v2468_v46, %s3736_s29  ;;  %v2375_v45 = vsel %vm901_vm7, %v2371_v36, 0.0  ;;  %v2372_v25 = vsel %vm897_vm6, %v2370_v40, 0.0  ;;  %v3677_v40 = vld [vmem:[%s5061_s5] ss:$0 sm:$0xff]  ;;  %s5103_s5 = smov 96  }
 0xaf4   :  { %2376 = vadd.xlane.f32.xlu0 %v2375_v45 }
 0xaf8   :  { %2373 = vadd.xlane.f32.xlu0 %v2372_v25 }
 0xb47   :  { %v2421_v21 = vpop.permute.xlu0 %2420  ;;  %v2423_v39 = vpop.permute.xlu1 %2422 }
 0xb48   :  { %v2426_v54 = vsel %vm897_vm6, %v2421_v21, 0.0  ;;  %v2429_v17 = vsel %vm901_vm7, %v2423_v39, 0.0  ;;  %v3678_v21 = vld [vmem:[%s5062_s6] ss:$0 sm:$0xff] }
 0xb49   :  { %2427 = vadd.xlane.f32.xlu0 %v2426_v54  ;;  %2430 = vadd.xlane.f32.xlu1 %v2429_v17 }
 0xb4e   :  { %v2475_v32 = vpop.permute.xlu1 %2474 }
 0xb4f   :  { %v2481_v9 = vsel %vm901_vm7, %v2475_v32, 0.0 }
 0xb50   :  { %2482 = vadd.xlane.f32.xlu1 %v2481_v9 }
 0xb52   :  { %v2473_v10 = vpop.permute.xlu1 %2472 }
 0xb53   :  { %v2478_v31 = vsel %vm897_vm6, %v2473_v10, 0.0 }
 0xb54   :  { %2479 = vadd.xlane.f32.xlu0 %v2478_v31 }
 0xb81   :  { %v2377_v29 = vpop.xlane.xlu0 %2376 }
 0xb82   :  { %v2378_v41 = vsel %vm503_vm3, %v2377_v29, 0.0 }
 0xb85   :  { %v2374_v63 = vpop.xlane.xlu0 %2373 }
 0xb86   :  { %v2379_v23 = vadd.f32 %v2378_v41, %v2374_v63 }
 0xb88   :  { %v2380_v16 = vrot.slane %v2379_v23, 4 }
 0xb8a   :  { %v2381_v1 = vadd.f32 %v2380_v16, %v2379_v23 }
 0xb8c   :  { %v2382_v19 = vrot.slane %v2381_v1, 2 }
 0xb8e   :  { %v2383_v38 = vadd.f32 %v2382_v19, %v2381_v1 }
 0xb90   :  { %v2384_v56 = vrot.slane %v2383_v38, 1 }
 0xb92   :  { %v2385_v58 = vadd.f32 %v2384_v56, %v2383_v38 }
 0xb94   :  { %v2386_v0 = vmul.f32 0.0030864198, %v2385_v58 }
 0xb96   :  { %v2387_v6 = vadd.f32 1e-05, %v2386_v0  ;;  %v3685_v0 = vld [vmem:[%s5063_s7 + $0x150] sm:$0xff]  }
 0xbd6   :  { %v2428_v42 = vpop.xlane.xlu0 %2427  ;;  %v2431_v26 = vpop.xlane.xlu1 %2430 }
 0xbd7   :  { %v2432_v18 = vsel %vm503_vm3, %v2431_v26, 0.0 }
 0xbd8   :  { %v2433_v15 = vadd.f32 %v2432_v18, %v2428_v42 }
 0xbda   :  { %v2434_v37 = vrot.slane %v2433_v15, 4 }
 0xbdc   :  { %v2435_v27 = vadd.f32 %v2434_v37, %v2433_v15  ;;  %v3679_v37 = vld [vmem:[%s5063_s7 + $0x180] sm:$0xff]  }
 0xbdd   :  { %v2483_v44 = vpop.xlane.xlu1 %2482 }
 0xbde   :  { %v2436_v52 = vrot.slane %v2435_v27, 2  ;;  %v2484_v59 = vsel %vm503_vm3, %v2483_v44, 0.0 }
 0xbe0   :  { %v2437_v55 = vadd.f32 %v2436_v52, %v2435_v27 }
 0xbe1   :  { %v2480_v51 = vpop.xlane.xlu0 %2479 }
 0xbe2   :  { %v2438_v48 = vrot.slane %v2437_v55, 1  ;;  %v2485_v49 = vadd.f32 %v2484_v59, %v2480_v51  ;;  %v3680_v59 = vld [vmem:[%s5063_s7 + $0x188] sm:$0xff]  }
 0xbe4   :  { %v2439_v50 = vadd.f32 %v2438_v48, %v2437_v55  ;;  %v2486_v57 = vrot.slane %v2485_v49, 4 }
 0xbe6   :  { %v2487_v60 = vadd.f32 %v2486_v57, %v2485_v49  ;;  %v2440_v61 = vmul.f32 0.0030864198, %v2439_v50  ;;  %v3681_v49 = vld [vmem:[%s5063_s7 + $0x100] sm:$0xff]   ;;  %v3682_v50 = vld [vmem:[%s5063_s7 + $0x148] sm:$0xff]  }
 0xbe8   :  { %v2488_v62 = vrot.slane %v2487_v60, 2  ;;  %v2441_v4 = vadd.f32 1e-05, %v2440_v61 }
 0xbea   :  { %v2489_v3 = vadd.f32 %v2488_v62, %v2487_v60  ;;  %3627 = vrsqrt.f32 %v2441_v4  ;;  %v3683_v60 = vld [vmem:[%s5063_s7 + $0x190] sm:$0xff]   ;;  %v3684_v62 = vld [vmem:[%s5063_s7 + $0x108] sm:$0xff]  }
 0xbeb   :  { %3629 = vrsqrt.f32 %v2387_v6  ;;  %v3687_v4 = vld [vmem:[%s5063_s7 + $0x110] sm:$0xff]   ;;  %v3689_v6 = vld [vmem:[%s5063_s7 + $0x1a0] sm:$0xff]  }
 0xbec   :  { %v2490_v5 = vrot.slane %v2489_v3, 1 }
 0xbee   :  { %v2491_v7 = vadd.f32 %v2490_v5, %v2489_v3  ;;  %v3686_v3 = vld [vmem:[%s5063_s7 + $0x198] sm:$0xff]  }
 0xbef   :  { %v3688_v5 = vld [vmem:[%s5063_s7 + $0x158] sm:$0xff]  }
 0xbf0   :  { %v2492_v11 = vmul.f32 0.0030864198, %v2491_v7  ;;  %v3690_v7 = vld [vmem:[%s5063_s7 + $0x118] sm:$0xff]  }
 0xbf2   :  { %v2493_v12 = vadd.f32 1e-05, %v2492_v11  ;;  %v3691_v11 = vld [vmem:[%s5063_s7 + $0x160] sm:$0xff]  }
 0xbf4   :  { %3631 = vrsqrt.f32 %v2493_v12  ;;  %v3628_v14 = vpop.eup %3627  ;;  %v3692_v12 = vld [vmem:[%s5063_s7 + $0x1a8] sm:$0xff]  }
 0xbf5   :  { %v3630_v8 = vpop.eup %3629  ;;  %v2443_v46 = vmul.f32 %v3628_v14, %v4836_v2  ;;  %v2444_v17 = vmul.f32 %v3628_v14, %v4839_v53  ;;  %v3693_v14 = vld [vmem:[%s5063_s7 + $0x120] sm:$0xff]  }
 0xbf6   :  { %v2389_v30 = vmul.f32 %v3630_v8, %v2368_v33  ;;  %v2390_v9 = vmul.f32 %v3630_v8, %v4860_v47  ;;  %v3694_v8 = vld [vmem:[%s5063_s7 + $0x168] sm:$0xff]  }
 0xbf8   :  { %v2497_v36 = vsel %vm897_vm6, %v2389_v30, %v2443_v46  ;;  %v2498_v29 = vsel %vm897_vm6, %v2390_v9, %v2444_v17  ;;  %v3695_v46 = vld [vmem:[%s5063_s7 + $0x1b0] sm:$0xff]   ;;  %v3705_v17 = vld [vmem:[%s5063_s7 + $0x1d8] sm:$0xff]  }
 0xbf9   :  { %v3697_v30 = vld [vmem:[%s5063_s7 + $0x170] sm:$0xff]  }
 0xbfe   :  { %v3632_v22 = vpop.eup %3631 }
 0xbff   :  { %v2495_v34 = vmul.f32 %v3632_v22, %v4853_v43  ;;  %v2496_v32 = vmul.f32 %v3632_v22, %v4848_v13  ;;  %v3696_v22 = vld [vmem:[%s5063_s7 + $0x128] sm:$0xff]  }
 0xc01   :  { %v2499_v45 = vsel %vm1045_vm8, %v2497_v36, %v2495_v34  ;;  %v2500_v63 = vsel %vm1045_vm8, %v2498_v29, %v2496_v32  ;;  %v3698_v34 = vld [vmem:[%s5063_s7 + $0x1b8] sm:$0xff]   ;;  %v3699_v36 = vld [vmem:[%s5063_s7 + $0x130] sm:$0xff]  }
 0xc02   :  { %v2501_v25 = vmul.f32 %v3677_v40, %v2499_v45  ;;  %v2502_v53 = vmul.f32 %v3677_v40, %v2500_v63  ;;  %v3700_v45 = vld [vmem:[%s5063_s7 + $0x178] sm:$0xff]   ;;  %v5112_v63 = vld [vmem:[#allocation14_spill] sm:$0xff] }
 0xc03   :  { %v5109_v32 = vld [vmem:[#allocation12_spill] sm:$0xff]  ;;  %v5111_v29 = vld [vmem:[#allocation13_spill] sm:$0xff] }
 0xc04   :  { %v2503_v39 = vadd.f32 %v3678_v21, %v2501_v25  ;;  %v2504_v13 = vadd.f32 %v3678_v21, %v2502_v53  ;;  %v3701_v25 = vld [vmem:[%s5063_s7 + $0x1c0] sm:$0xff]   ;;  %v3702_v21 = vld [vmem:[%s5063_s7 + $0x138] sm:$0xff]  }
 0xc06   :  { %v2518_v54 = vrot.slane %v2503_v39, 4  ;;  %v2514_v2 = vrot.slane %v2503_v39, 3  ;;  %v2522_v43 = vrot.slane %v2503_v39, 5  ;;  %v2510_v33 = vrot.slane %v2503_v39, 2 }
 0xc07   :  { %v2530_v10 = vrot.slane %v2503_v39, 7  ;;  %v2506_v31 = vrot.slane %v2503_v39, 1  ;;  %v2526_v41 = vrot.slane %v2503_v39, 6 }
 0xc08   :  { %2519 = vrot.lane.b32.xlu0 %v2518_v54, %s3737_s22  ;;  %2515 = vrot.lane.b32.xlu1 %v2514_v2, %s3738_s23  ;;  %v3703_v54 = vld [vmem:[%s5063_s7 + $0x1c8] sm:$0xff]  }
 0xc09   :  { %v5107_v2 = vld [vmem:[#allocation10_spill] sm:$0xff] }
 0xc0c   :  { %2523 = vrot.lane.b32.xlu0 %v2522_v43, %s3739_s24  ;;  %2511 = vrot.lane.b32.xlu1 %v2510_v33, %s3740_s25  ;;  %v3704_v43 = vld [vmem:[%s5063_s7 + $0x1d0] sm:$0xff]  }
 0xc0d   :  { %v5108_v33 = vld [vmem:[#allocation11_spill] sm:$0xff] }
 0xc10   :  { %2531 = vrot.lane.b32.xlu0 %v2530_v10, %s3741_s26  ;;  %2507 = vrot.lane.b32.xlu1 %v2506_v31, %s3742_s30  ;;  %v5110_v10 = vld [vmem:[#allocation9_spill] sm:$0xff] }
 0xc14   :  { %2527 = vrot.lane.b32.xlu1 %v2526_v41, %s3743_s13  ;;  %v5114_v41 = vld [vmem:[#allocation16_spill] sm:$0xff] }
 0xc18   :  { %2535 = vrot.lane.b32.xlu1 %v2504_v13, %s5103_s5 }
 0xc7a   :  { %v4897_v23 = vpop.permute.xlu0 %2519  ;;  %v2516_v47 = vpop.permute.xlu1 %2515 }
 0xc7b   :  { %v2541_v16 = vsel %vm1103_vm9, %v2516_v47, %v4897_v23 }
 0xc7c   :  { %v2549_v1 = vpack.c.bf16 %v2541_v16, %v2541_v16 }
 0xc7e   :  { %2629 = vmatprep.mubr.bf16.mxu1 %v2549_v1  ;;  %v2512_v42 = vpop.permute.xlu1 %2511  ;;  %v4902_v15 = vpop.permute.xlu0 %2523 }
 0xc7f   :  { %v2540_v26 = vsel %vm1101_vm10, %v2512_v42, %v2516_v47  ;;  %v2542_v40 = vsel %vm5106_vm4, %v4897_v23, %v4902_v15 }
 0xc80   :  { %v2548_v18 = vpack.c.bf16 %v2540_v26, %v2540_v26 }
 0xc82   :  { %2630 = vmatmul.mubr.bf16.vlgmr.msra.gmra.mrb[40].mxu1 %v2548_v18  ;;  %v2508_v19 = vpop.permute.xlu1 %2507  ;;  %v4910_v56 = vpop.permute.xlu0 %2531 }
 0xc83   :  { %2678 = vmatpush1.bf16.msra.mxu1 %v3679_v37  ;;  %v2538_v27 = vsel %vm1097_vm11, %v2503_v39, %v2508_v19  ;;  %v2539_v38 = vsel %vm1099_vm12, %v2508_v19, %v2512_v42  ;;  %v2550_v39 = vpack.c.bf16 %v2542_v40, %v2542_v40 }
 0xc84   :  { %v2546_v52 = vpack.c.bf16 %v2538_v27, %v2538_v27  ;;  %v2547_v44 = vpack.c.bf16 %v2539_v38, %v2539_v38  ;;  %2679 = vmatprep.subr.bf16.mxu1 %v5090_v20 }
 0xc86   :  { %2589 = vmatprep.mubr.bf16.mxu0 %v2547_v44  ;;  %v2528_v55 = vpop.permute.xlu1 %2527 }
 0xc87   :  { %2680 = vmatpush1.bf16.msra.mxu1 %v3680_v59  ;;  %v2543_v51 = vsel %vm1107_vm13, %v4902_v15, %v2528_v55  ;;  %2590 = vmatmul.mubr.bf16.vlgmr.msra.gmra.mrb[36].mxu0 %v2546_v52 }
 0xc88   :  { %v2544_v48 = vsel %vm5104_vm1, %v2543_v51, %v4910_v56  ;;  %3211 = vmatpush3.bf16.msra.mxu0 %v3681_v49  ;;  %2681 = vmatprep.subr.bf16.mxu1 %v5090_v20 }
 0xc89   :  { %3212 = vmatprep.subr.bf16.mxu0 %v3682_v50  ;;  %v2551_v57 = vpack.c.bf16 %v2544_v48, %v2544_v48 }
 0xc8a   :  { %v4926_v58 = vpop.permute.xlu1 %2535 }
 0xc8b   :  { %2682 = vmatpush1.bf16.msra.mxu1 %v3683_v60  ;;  %v2553_v61 = vpack.c.bf16 %v4926_v58, %v4926_v58  ;;  %2669 = vmatprep.mubr.bf16.mxu0 %v2551_v57  ;;  %v2545_v9 = vsel %vm1111_vm14, %v4910_v56, %v4926_v58 }
 0xc8c   :  { %3213 = vmatpush3.bf16.msra.mxu0 %v3684_v62  ;;  %2683 = vmatprep.subr.bf16.mxu1 %v5090_v20  ;;  %v2552_v31 = vpack.c.bf16 %v2545_v9, %v2545_v9 }
 0xc8d   :  { %3010 = vmatprep.mubr.msk.bf16.mxu1 %vm5105_vm2, %v2553_v61  ;;  %3214 = vmatprep.subr.bf16.mxu0 %v3685_v0 }
 0xc8f   :  { %2684 = vmatpush1.bf16.msra.mxu1 %v3686_v3 }
 0xc90   :  { %3215 = vmatpush3.bf16.msra.mxu0 %v3687_v4  ;;  %2685 = vmatprep.subr.bf16.mxu1 %v5090_v20 }
 0xc91   :  { %3216 = vmatprep.subr.bf16.mxu0 %v3688_v5 }
 0xc93   :  { %2686 = vmatpush1.bf16.msra.mxu1 %v3689_v6 }
 0xc94   :  { %3217 = vmatpush3.bf16.msra.mxu0 %v3690_v7  ;;  %2687 = vmatprep.subr.bf16.mxu1 %v5090_v20 }
 0xc95   :  { %3218 = vmatprep.subr.bf16.mxu0 %v3691_v11 }
 0xc97   :  { %2688 = vmatpush1.bf16.msra.mxu1 %v3692_v12 }
 0xc98   :  { %3219 = vmatpush3.bf16.msra.mxu0 %v3693_v14  ;;  %2689 = vmatprep.subr.bf16.mxu1 %v5090_v20 }
 0xc99   :  { %3220 = vmatprep.subr.bf16.mxu0 %v3694_v8 }
 0xc9b   :  { %2690 = vmatpush1.bf16.msra.mxu1 %v3695_v46 }
 0xc9c   :  { %3221 = vmatpush3.bf16.msra.mxu0 %v3696_v22  ;;  %2691 = vmatprep.subr.bf16.mxu1 %v5090_v20 }
 0xc9d   :  { %3222 = vmatprep.subr.bf16.mxu0 %v3697_v30 }
 0xc9f   :  { %2692 = vmatpush1.bf16.msra.mxu1 %v3698_v34 }
 0xca0   :  { %3223 = vmatpush3.bf16.msra.mxu0 %v3699_v36  ;;  %2693 = vmatprep.subr.bf16.mxu1 %v5090_v20 }
 0xca1   :  { %3224 = vmatprep.subr.bf16.mxu0 %v3700_v45 }
 0xca3   :  { %2694 = vmatpush1.bf16.msra.mxu1 %v3701_v25 }
 0xca4   :  { %3225 = vmatpush3.bf16.msra.mxu0 %v3702_v21  ;;  %2695 = vmatprep.subr.bf16.mxu1 %v5090_v20 }
 0xca5   :  { %3446 = vmatprep.subr.bf16.mxu0 %v5091_v35 }
 0xca7   :  { %2670 = vmatmul.mubr.bf16.vlgmr.msra.gmra.mrb[40].mxu0 %v2550_v39  ;;  %2696 = vmatpush1.bf16.msra.mxu1 %v3703_v54 }
 0xca8   :  { %2697 = vmatprep.subr.bf16.mxu1 %v5090_v20  ;;  %3447 = vmatpush3.bf16.msra.mxu0 %v5107_v2 }
 0xca9   :  { %3448 = vmatprep.subr.bf16.mxu0 %v5091_v35  ;;  %3460 = vmatprep.mubr.msk.bf16.mxu0 %vm3731_vm0, %v5091_v35  ;;  %vm2768_vm0 = vcmask 74752  }
 0xcab   :  { %2698 = vmatpush1.bf16.msra.mxu1 %v3704_v43 }
 0xcac   :  { %2699 = vmatprep.subr.bf16.mxu1 %v5090_v20  ;;  %3449 = vmatpush3.bf16.msra.mxu0 %v5108_v33 }
 0xcad   :  { %3450 = vmatprep.subr.bf16.mxu0 %v5091_v35 }
 0xcaf   :  { %2700 = vmatpush1.bf16.msra.mxu1 %v3705_v17 }
 0xcb0   :  { %2701 = vmatprep.subr.bf16.mxu1 %v5090_v20  ;;  %3451 = vmatpush3.bf16.msra.mxu0 %v5109_v32  ;;  %v5113_v20 = vld [vmem:[#allocation15_spill] sm:$0xff] }
 0xcb1   :  { %3452 = vmatprep.subr.bf16.mxu0 %v5091_v35 }
 0xcb3   :  { %2702 = vmatpush1.bf16.msra.mxu1 %v5110_v10 }
 0xcb4   :  { %3453 = vmatpush3.bf16.msra.mxu0 %v5111_v29 }
 0xcb5   :  { %3454 = vmatprep.subr.bf16.mxu0 %v5091_v35 }
 0xcb6   :  { %2710 = vmatmul.mubr.bf16.vlgmr.msra.gmra.mrb[44].mxu1 %v2552_v31 }
 0xcb8   :  { %3455 = vmatpush3.bf16.msra.mxu0 %v5112_v63 }
 0xcb9   :  { %3456 = vmatprep.subr.bf16.mxu0 %v5091_v35 }
 0xcbc   :  { %3457 = vmatpush3.bf16.msra.mxu0 %v5113_v20 }
 0xcbd   :  { %3458 = vmatprep.subr.bf16.mxu0 %v5091_v35 }
 0xcc0   :  { %3459 = vmatpush3.bf16.msra.mxu0 %v5114_v41 }
 0xd55   :  { %v3204_v53 = vpop.f32.mrb[40].mxu1 }
 0xd56   :  { %v3205_v13 = vpop.f32.mrb[41].mxu1 }
 0xd57   :  { %v3206_v23 = vadd.f32 %v3205_v13, %v3204_v53  ;;  %v3207_v47 = vpop.f32.mrb[42].mxu1 }
 0xd58   :  { %v3208_v16 = vpop.f32.mrb[43].mxu1 }
 0xd5a   :  { %v3182_v1 = vpop.f32.mrb[36].mxu0 }
 0xd5b   :  { %v3183_v42 = vpop.f32.mrb[37].mxu0 }
 0xd5c   :  { %v3184_v26 = vadd.f32 %v3183_v42, %v3182_v1  ;;  %v3185_v18 = vpop.f32.mrb[38].mxu0 }
 0xd5d   :  { %v3186_v15 = vpop.f32.mrb[39].mxu0 }
 0xd5e   :  { %v2592_v19 = vadd.f32 %v3184_v26, %v4618_v28  ;;  %v45_v28 = vld [vmem:[%s5066_s10] sm:$0x1]  ;;  %s3745_s10 = smov [#allocation3]  }
 0xd5f   :  { %v1873_v0 = vadd.f32 %v4688_v24, %v45_v28  ;;  %s2803_s5 = sshll.u32 %s3745_s10, 4  ;;  %s2804_s5 = int_to_ptr.vmem [resolvable:$true] %s2803_s5 }
 0xd60   :  { %v2632_v37 = vadd.f32 %v3206_v23, %v2592_v19  ;;  %s3706_s6 = scalar_lea.vmem %s2804_s5, 32  ;;  %p3711_p1 = scmp.lt.s32.totalorder %s2804_s5, %s2804_s5 }
 0xd61   :  { %p3707_p0 = scmp.ne.s32.totalorder %s2804_s5, %s3706_s6  ;;  %p3712_p2 = scmp.lt.s32.totalorder %s3706_s6, %s3706_s6 }
 0xd63   :  { %p3713_p3 = por %p3712_p2, %p3711_p1 }
 0xd65   :  { %p3714_p4 = pnand %p3713_p3, %p3707_p0 }
 0xd7a   :  { %v3226_v27 = vpop.f32.mrb[40].mxu0 }
 0xd7b   :  { %v3227_v38 = vpop.f32.mrb[41].mxu0 }
 0xd7c   :  { %v3228_v52 = vadd.f32 %v3227_v38, %v3226_v27  ;;  %v3229_v44 = vpop.f32.mrb[42].mxu0 }
 0xd7d   :  { %v3230_v35 = vpop.f32.mrb[43].mxu0 }
 0xd7e   :  { %v2672_v55 = vadd.f32 %v3228_v52, %v2632_v37 }
 0xd89   :  { %v2711_v56 = vpop.f32.mrb[44].mxu1 }
 0xd8a   :  { %v2712_v59 = vadd.f32 %v2711_v56, %v2672_v55  ;;  %v2713_v51 = vpop.f32.mrb[45].mxu1 }
 0xd8b   :  { %v2714_v48 = vpop.f32.mrb[46].mxu1 }
 0xd8c   :  { %v2717_v49 = vmax.f32 %v2712_v59, 0.0  ;;  %v2715_v50 = vpop.f32.mrb[47].mxu1 }
 0xd8e   :  { %v2718_v57 = vpack.c.bf16 %v2717_v49, %v2717_v49 }
 0xd90   :  { %3461 = vmatmul.mubr.msk.bf16.vlgmr.msra.gmra.mrb[44].mxu0 %vm1830_vm15, %v2718_v57 }
 0xe63   :  { %v2756_v58 = vpop.f32.mrb[44].mxu0 }
 0xe64   :  { %v2757_v60 = vadd.f32 %v2756_v58, %v45_v28  ;;  %v3462_v61 = vpop.f32.mrb[45].mxu0 }
 0xe65   :  { %v2759_v62 = vpop.f32.mrb[46].mxu0 }
 0xe66   :  { %v2763_v3 = vrot.slane %v2757_v60, 7  ;;  %v3463_v4 = vpop.f32.mrb[47].mxu0 }
 0xe68   :  { %v2765_v5 = vsel %vm503_vm3, %v1873_v0, %v2763_v3 }
 0xe69   :  { %2769 = vst.msk [vmem:[#allocation2] sm:$0x3] %vm2768_vm0, %v2765_v5 }
 0xe70   :  { %v2774_v6 = vld [vmem:[#allocation2] sm:$0x3] }
 0xe71   :  { %v2775_v7 = vsel %vm2768_vm0, %v2774_v6, -inf }
 0xe72   :  { %v2776_v11 = vrot.slane %v2775_v7, 4 }
 0xe74   :  { %v2777_v12 = vmax.f32 %v2775_v7, %v2776_v11 }
 0xe76   :  { %v2778_v14 = vrot.slane %v2777_v12, 2 }
 0xe78   :  { %v2779_v8 = vmax.f32 %v2777_v12, %v2778_v14 }
 0xe7a   :  { %v2780_v46 = vrot.slane %v2779_v8, 1 }
 0xe7c   :  { %v2781_v22 = vmax.f32 %v2779_v8, %v2780_v46 }
 0xe7e   :  { %v2782_v30 = vsub.f32 %v2774_v6, %v2781_v22 }
 0xe80   :  { %v2783_v34 = vmul.f32 1.442695, %v2782_v30 }
 0xe82   :  { %3633 = vpow2.f32 %v2783_v34 }
 0xe8c   :  { %v3634_v24 = vpop.eup %3633 }
 0xe8d   :  { %v2785_v36 = vsel %vm2768_vm0, %v3634_v24, 0.0 }
 0xe8e   :  { %v2786_v45 = vrot.slane %v2785_v36, 4 }
 0xe90   :  { %v2787_v40 = vadd.f32 %v2786_v45, %v2785_v36 }
 0xe92   :  { %v2788_v25 = vrot.slane %v2787_v40, 2 }
 0xe94   :  { %v2789_v21 = vadd.f32 %v2788_v25, %v2787_v40 }
 0xe96   :  { %v2790_v39 = vrot.slane %v2789_v21, 1 }
 0xe98   :  { %v2791_v54 = vadd.f32 %v2790_v39, %v2789_v21 }
 0xe9a   :  { %3635 = vlog2.f32 %v2791_v54 }
 0xea4   :  { %v3636_v2 = vpop.eup %3635 }
 0xea5   :  { %v2793_v43 = vmul.f32 0.6931472, %v3636_v2 }
 0xea7   :  { %v2794_v33 = vadd.f32 %v2793_v43, %v2781_v22 }
 0xea9   :  { %v2795_v17 = vsub.f32 %v2774_v6, %v2794_v33 }
 0xeab   :  { %2796 = vst.msk [vmem:[#allocation3] sm:$0x3] %vm2768_vm0, %v2795_v17 }
 0xeac   :  { %3717 = shalt.err (!%p3714_p4)
}
 0xead   :  { %s3718_s24 = scalar_lea.hbm %s5067_s11, 32 }
 0xeae   :  { %p3719_p5 = scmp.ne.s32.totalorder %s5067_s11, %s3718_s24  ;;  %p3722_p6 = scmp.lt.u32.totalorder %s3718_s24, %s5067_s11 }
 0xeb0   :  { %p3724_p7 = pnand %p3722_p6, %p3719_p5 }
 0xeb2   :  { %3727 = shalt.err (!%p3724_p7)
}
 0xeb3   :  { %2806 = dma.vmem_to_hbm [thread:$0]  %s2804_s5, 32, %s5067_s11, [#allocation4]  }
 0xeb4   :  { %3728 = dma.done.wait [#allocation4], 32  }
 0xeb5   :  { %3729 = vsyncadd [#allocation4], 4294967264 }
 0xeb6   :  { %2810 = vsyncpa [#allocation4], 1 }

</bundles_post_ra>
